<compile_context>
chip_gen: v5e
topology: v5e:2x2
jax: 0.10.0
libtpu: 0.0.40
codegen_flags: <defaults>
</compile_context>

<pallas_src>
import functools

import jax
import jax.numpy as jnp
from jax.experimental import pallas as pl
from jax.experimental.pallas import tpu as pltpu

HIDDEN = 256
LANE = 128


def _round_up(x, m):
    return ((x + m - 1) // m) * m


def actor_kernel(x_ref,
                 w1_ref, b1_ref, w2_ref, b2_ref, w3_ref, b3_ref, w4_ref, b4_ref,
                 wh_ref, bh_ref,
                 out_ref,
                 *, action_size, min_val):
    """One batch tile of the Actor MLP.

    Output is the fused, lane-padded (TB, head_pad) block:
      cols [0, A)          -> amean
      cols [A, 2A)         -> softplus(std) + min_val
      cols [2A, head_pad)  -> padding (sliced off in the wrapper)
    """
    act_dtype = w1_ref.dtype  # bf16 by default (MXU-native)

    def linear(h, w_ref, b_ref):
        # MXU matmul with f32 accumulation; bias add stays f32.
        return jnp.dot(h, w_ref[...],
                       preferred_element_type=jnp.float32) + b_ref[...]

    h = x_ref[...]                                                   # (TB, S)
    h = jnp.maximum(linear(h, w1_ref, b1_ref), 0.0).astype(act_dtype)  # fc1+relu
    h = jnp.maximum(linear(h, w2_ref, b2_ref), 0.0).astype(act_dtype)  # fc2+relu
    h = jnp.maximum(linear(h, w3_ref, b3_ref), 0.0).astype(act_dtype)  # fc3+relu
    h = jnp.maximum(linear(h, w4_ref, b4_ref), 0.0).astype(act_dtype)  # fc4+relu

    head = linear(h, wh_ref, bh_ref)                                 # (TB, HP) f32

    # numerically-stable softplus + min_val for the std (and padding) columns
    sp = jnp.maximum(head, 0.0) + jnp.log1p(jnp.exp(-jnp.abs(head))) + min_val
    col = jax.lax.broadcasted_iota(jnp.int32, head.shape, dimension=1)
    out_ref[...] = jnp.where(col < action_size, head, sp).astype(out_ref.dtype)


def actor_forward(state, params, *, min_val=1e-7, block_b=2048):
    """runtype == 1 path: returns (amean, a_std)."""
    b, s = state.shape
    two_a = params["wh"].shape[1]
    action_size = two_a // 2
    head_pad = _round_up(two_a, LANE)       # lane-dense output / full MXU N dim

    compute_dtype = params["w1"].dtype
    state = state.astype(compute_dtype)     # halves input DMA bytes for bf16 weights

    # Batch tile: multiple of 8 sublanes, large enough to amortize per-step
    # pipeline overhead; keep >=2 blocks whenever possible so the "parallel"
    # batch axis can shard across v7x's two TensorCores.
    tb = min(block_b, _round_up(b, 8))
    bp = _round_up(b, tb)
    if bp // tb == 1 and tb >= 16:
        tb = _round_up((tb + 1) // 2, 8)
        bp = _round_up(b, tb)
    nb = bp // tb
    if bp != b:
        state = jnp.pad(state, ((0, bp - b), (0, 0)))

    # Zero-pad the fused head to 128 output lanes (padding sliced off below).
    wh, bh = params["wh"], params["bh"]
    if head_pad != two_a:
        wh = jnp.pad(wh, ((0, 0), (0, head_pad - two_a)))
        bh = jnp.pad(bh, ((0, 0), (0, head_pad - two_a)))

    flat_params = (
        params["w1"], params["b1"],
        params["w2"], params["b2"],
        params["w3"], params["b3"],
        params["w4"], params["b4"],
        wh, bh,
    )

    weight_bytes = sum(int(p.size) * p.dtype.itemsize for p in flat_params)
    vmem_need = (2 * tb * s * state.dtype.itemsize    # x tile (double-buffered)
                 + 2 * tb * head_pad * 4              # out tile (double-buffered, f32)
                 + 2 * weight_bytes)                  # resident weights (<=2 buffers)
    vmem_limit = int(min(max(2 * vmem_need, 16 << 20), 64 << 20))

    cost = pl.CostEstimate(
        flops=2 * bp * (s * HIDDEN + 3 * HIDDEN * HIDDEN + HIDDEN * head_pad),
        transcendentals=2 * bp * head_pad,            # exp + log1p over all head cols
        bytes_accessed=weight_bytes
        + bp * s * state.dtype.itemsize
        + bp * head_pad * 4,
    )

    kernel = functools.partial(actor_kernel,
                               action_size=action_size, min_val=min_val)

    def run(weight_spec_kwargs):
        in_specs = [pl.BlockSpec((tb, s), lambda i: (i, 0))]   # activations: batch-tiled
        for p in flat_params:                                  # weights/biases: resident
            in_specs.append(
                pl.BlockSpec(p.shape, lambda i: (0, 0), **weight_spec_kwargs))
        return pl.pallas_call(
            kernel,
            grid=(nb,),
            in_specs=in_specs,
            out_specs=pl.BlockSpec((tb, head_pad), lambda i: (i, 0)),
            out_shape=jax.ShapeDtypeStruct((bp, head_pad), jnp.float32),
            compiler_params=pltpu.CompilerParams(
                dimension_semantics=("parallel",),
                vmem_limit_bytes=vmem_limit),
            cost_estimate=cost,
        )(state, *flat_params)

    try:
        # Weights never change block index -> single buffer (saves ~0.5 MB VMEM).
        fused = run(dict(pipeline_mode=pl.Buffered(1)))
    except Exception:
        # Fallback: default (double) buffering if Buffered(1) is not accepted.
        fused = run({})

    amean = fused[:b, :action_size]
    a_std = fused[:b, action_size:two_a]
    return amean, a_std


def init_actor_params(key, state_size, action_size, *, param_dtype=jnp.bfloat16):
    """Orthogonal init (std=1.0) + constant bias 1e-6, mirroring layer_init.

    Weights are stored as (in, out) so the kernel computes y = x @ W + b (same
    math as PyTorch's y = x @ W.T + b with W (out, in)).  The amean and std
    head weights are concatenated into one fused (256, 2*A) head; the forward
    wrapper zero-pads it to 128 lanes.
    """
    ortho = jax.nn.initializers.orthogonal(scale=1.0)
    keys = jax.random.split(key, 6)
    sizes = [
        ("w1", "b1", state_size, HIDDEN),
        ("w2", "b2", HIDDEN, HIDDEN),
        ("w3", "b3", HIDDEN, HIDDEN),
        ("w4", "b4", HIDDEN, HIDDEN),
    ]
    params = {}
    for k, (wn, bn, fin, fout) in zip(keys[:4], sizes):
        params[wn] = ortho(k, (fin, fout), jnp.float32).astype(param_dtype)
        params[bn] = jnp.full((1, fout), 1e-6, jnp.float32)

    wm = ortho(keys[4], (HIDDEN, action_size), jnp.float32)
    ws = ortho(keys[5], (HIDDEN, action_size), jnp.float32)
    params["wh"] = jnp.concatenate([wm, ws], axis=1).astype(param_dtype)
    params["bh"] = jnp.full((1, 2 * action_size), 1e-6, jnp.float32)
    return params


def actor_reference(state, params, *, min_val=1e-7):
    """Pure-JAX f32 reference of the same forward pass."""
    h = state
    for wn, bn in [("w1", "b1"), ("w2", "b2"), ("w3", "b3"), ("w4", "b4")]:
        h = jnp.maximum(h @ params[wn].astype(jnp.float32) + params[bn], 0.0)
    head = h @ params["wh"].astype(jnp.float32) + params["bh"]
    a = head.shape[1] // 2
    return head[:, :a], jax.nn.softplus(head[:, a:]) + min_val


if __name__ == "__main__":
    # TODO(synk): only the runtype==1 branch (amean, softplus std) is implemented,
    # matching the module's default; the runtype!=1 softmax branch is omitted.
    key = jax.random.PRNGKey(0)
    state_size = 32
    action_size = 8
    batch = 2

    pkey, xkey = jax.random.split(key)
    params = init_actor_params(pkey, state_size, action_size)
    state = jax.random.normal(xkey, (batch, state_size), jnp.float32)

    amean, a_std = actor_forward(state, params)
    jax.block_until_ready((amean, a_std))

    assert amean.shape == (batch, action_size)
    assert a_std.shape == (batch, action_size)
    assert bool(jnp.all(a_std > 0))
    assert bool(jnp.all(jnp.isfinite(amean)))

    ref_mean, ref_std = actor_reference(state, params)
    assert bool(jnp.allclose(amean, ref_mean, rtol=8e-2, atol=3e-2))
    assert bool(jnp.allclose(a_std, ref_std, rtol=8e-2, atol=3e-2))

    # Also exercise the padded, multi-block (megacore) path.
    state2 = jax.random.normal(jax.random.PRNGKey(1), (40, state_size), jnp.float32)
    amean2, a_std2 = actor_forward(state2, params)
    jax.block_until_ready((amean2, a_std2))
    ref_mean2, ref_std2 = actor_reference(state2, params)
    assert amean2.shape == (40, action_size) and a_std2.shape == (40, action_size)
    assert bool(jnp.allclose(amean2, ref_mean2, rtol=8e-2, atol=3e-2))
    assert bool(jnp.allclose(a_std2, ref_std2, rtol=8e-2, atol=3e-2))

    print("KERNEL_OK")
</pallas_src>

<mosaic_0001>
module attributes {stable_mosaic.version = 11 : i64} {
  func.func @actor_kernel(%arg0: i32, %arg1: memref<8x32xbf16, #tpu.memory_space<vmem>>, %arg2: memref<32x256xbf16, #tpu.memory_space<vmem>>, %arg3: memref<1x256xf32, #tpu.memory_space<vmem>>, %arg4: memref<256x256xbf16, #tpu.memory_space<vmem>>, %arg5: memref<1x256xf32, #tpu.memory_space<vmem>>, %arg6: memref<256x256xbf16, #tpu.memory_space<vmem>>, %arg7: memref<1x256xf32, #tpu.memory_space<vmem>>, %arg8: memref<256x256xbf16, #tpu.memory_space<vmem>>, %arg9: memref<1x256xf32, #tpu.memory_space<vmem>>, %arg10: memref<256x128xbf16, #tpu.memory_space<vmem>>, %arg11: memref<1x128xf32, #tpu.memory_space<vmem>>, %arg12: memref<8x128xf32, #tpu.memory_space<vmem>>) attributes {dimension_semantics = [#tpu.dimension_semantics<parallel>], iteration_bounds = array<i64: 1>, scalar_prefetch = 0 : i64, scratch_operands = 0 : i64, tpu.core_type = #tpu.core_type<tc>, window_params = [{transform_indices = @transform_0, window_bounds = array<i64: 8, 32>}, {pipeline_mode = #tpu.pipeline_mode<synchronous>, transform_indices = @transform_1, window_bounds = array<i64: 32, 256>}, {pipeline_mode = #tpu.pipeline_mode<synchronous>, transform_indices = @transform_2, window_bounds = array<i64: 1, 256>}, {pipeline_mode = #tpu.pipeline_mode<synchronous>, transform_indices = @transform_3, window_bounds = array<i64: 256, 256>}, {pipeline_mode = #tpu.pipeline_mode<synchronous>, transform_indices = @transform_4, window_bounds = array<i64: 1, 256>}, {pipeline_mode = #tpu.pipeline_mode<synchronous>, transform_indices = @transform_5, window_bounds = array<i64: 256, 256>}, {pipeline_mode = #tpu.pipeline_mode<synchronous>, transform_indices = @transform_6, window_bounds = array<i64: 1, 256>}, {pipeline_mode = #tpu.pipeline_mode<synchronous>, transform_indices = @transform_7, window_bounds = array<i64: 256, 256>}, {pipeline_mode = #tpu.pipeline_mode<synchronous>, transform_indices = @transform_8, window_bounds = array<i64: 1, 256>}, {pipeline_mode = #tpu.pipeline_mode<synchronous>, transform_indices = @transform_9, window_bounds = array<i64: 256, 128>}, {pipeline_mode = #tpu.pipeline_mode<synchronous>, transform_indices = @transform_10, window_bounds = array<i64: 1, 128>}, {transform_indices = @transform_11, window_bounds = array<i64: 8, 128>}]} {
    %c0 = arith.constant 0 : index
    %c0_0 = arith.constant 0 : index
    %0 = vector.load %arg1[%c0, %c0_0] : memref<8x32xbf16, #tpu.memory_space<vmem>>, vector<8x32xbf16>
    %c0_1 = arith.constant 0 : index
    %c0_2 = arith.constant 0 : index
    %1 = vector.load %arg2[%c0_1, %c0_2] : memref<32x256xbf16, #tpu.memory_space<vmem>>, vector<32x256xbf16>
    %cst = arith.constant dense<0.000000e+00> : vector<8x256xf32>
    %2 = tpu.matmul %0, %1, %cst {dimension_numbers = #tpu.dot_dimension_numbers<[1], [0], [0], [1], [0, 0, 1, 1], [], []>} : vector<8x32xbf16>, vector<32x256xbf16>, vector<8x256xf32> -> vector<8x256xf32>
    %c0_3 = arith.constant 0 : index
    %c0_4 = arith.constant 0 : index
    %3 = vector.load %arg3[%c0_3, %c0_4] : memref<1x256xf32, #tpu.memory_space<vmem>>, vector<1x256xf32>
    %4 = vector.broadcast %3 : vector<1x256xf32> to vector<8x256xf32>
    %5 = arith.addf %2, %4 : vector<8x256xf32>
    %cst_5 = arith.constant 0.000000e+00 : f32
    %6 = vector.broadcast %cst_5 : f32 to vector<8x256xf32>
    %7 = arith.maximumf %5, %6 : vector<8x256xf32>
    %8 = arith.truncf %7 : vector<8x256xf32> to vector<8x256xbf16>
    %c0_6 = arith.constant 0 : index
    %c0_7 = arith.constant 0 : index
    %9 = vector.load %arg4[%c0_6, %c0_7] : memref<256x256xbf16, #tpu.memory_space<vmem>>, vector<256x256xbf16>
    %cst_8 = arith.constant dense<0.000000e+00> : vector<8x256xf32>
    %10 = tpu.matmul %8, %9, %cst_8 {dimension_numbers = #tpu.dot_dimension_numbers<[1], [0], [0], [1], [0, 0, 1, 1], [], []>} : vector<8x256xbf16>, vector<256x256xbf16>, vector<8x256xf32> -> vector<8x256xf32>
    %c0_9 = arith.constant 0 : index
    %c0_10 = arith.constant 0 : index
    %11 = vector.load %arg5[%c0_9, %c0_10] : memref<1x256xf32, #tpu.memory_space<vmem>>, vector<1x256xf32>
    %12 = vector.broadcast %11 : vector<1x256xf32> to vector<8x256xf32>
    %13 = arith.addf %10, %12 : vector<8x256xf32>
    %cst_11 = arith.constant 0.000000e+00 : f32
    %14 = vector.broadcast %cst_11 : f32 to vector<8x256xf32>
    %15 = arith.maximumf %13, %14 : vector<8x256xf32>
    %16 = arith.truncf %15 : vector<8x256xf32> to vector<8x256xbf16>
    %c0_12 = arith.constant 0 : index
    %c0_13 = arith.constant 0 : index
    %17 = vector.load %arg6[%c0_12, %c0_13] : memref<256x256xbf16, #tpu.memory_space<vmem>>, vector<256x256xbf16>
    %cst_14 = arith.constant dense<0.000000e+00> : vector<8x256xf32>
    %18 = tpu.matmul %16, %17, %cst_14 {dimension_numbers = #tpu.dot_dimension_numbers<[1], [0], [0], [1], [0, 0, 1, 1], [], []>} : vector<8x256xbf16>, vector<256x256xbf16>, vector<8x256xf32> -> vector<8x256xf32>
    %c0_15 = arith.constant 0 : index
    %c0_16 = arith.constant 0 : index
    %19 = vector.load %arg7[%c0_15, %c0_16] : memref<1x256xf32, #tpu.memory_space<vmem>>, vector<1x256xf32>
    %20 = vector.broadcast %19 : vector<1x256xf32> to vector<8x256xf32>
    %21 = arith.addf %18, %20 : vector<8x256xf32>
    %cst_17 = arith.constant 0.000000e+00 : f32
    %22 = vector.broadcast %cst_17 : f32 to vector<8x256xf32>
    %23 = arith.maximumf %21, %22 : vector<8x256xf32>
    %24 = arith.truncf %23 : vector<8x256xf32> to vector<8x256xbf16>
    %c0_18 = arith.constant 0 : index
    %c0_19 = arith.constant 0 : index
    %25 = vector.load %arg8[%c0_18, %c0_19] : memref<256x256xbf16, #tpu.memory_space<vmem>>, vector<256x256xbf16>
    %cst_20 = arith.constant dense<0.000000e+00> : vector<8x256xf32>
    %26 = tpu.matmul %24, %25, %cst_20 {dimension_numbers = #tpu.dot_dimension_numbers<[1], [0], [0], [1], [0, 0, 1, 1], [], []>} : vector<8x256xbf16>, vector<256x256xbf16>, vector<8x256xf32> -> vector<8x256xf32>
    %c0_21 = arith.constant 0 : index
    %c0_22 = arith.constant 0 : index
    %27 = vector.load %arg9[%c0_21, %c0_22] : memref<1x256xf32, #tpu.memory_space<vmem>>, vector<1x256xf32>
    %28 = vector.broadcast %27 : vector<1x256xf32> to vector<8x256xf32>
    %29 = arith.addf %26, %28 : vector<8x256xf32>
    %cst_23 = arith.constant 0.000000e+00 : f32
    %30 = vector.broadcast %cst_23 : f32 to vector<8x256xf32>
    %31 = arith.maximumf %29, %30 : vector<8x256xf32>
    %32 = arith.truncf %31 : vector<8x256xf32> to vector<8x256xbf16>
    %c0_24 = arith.constant 0 : index
    %c0_25 = arith.constant 0 : index
    %33 = vector.load %arg10[%c0_24, %c0_25] : memref<256x128xbf16, #tpu.memory_space<vmem>>, vector<256x128xbf16>
    %cst_26 = arith.constant dense<0.000000e+00> : vector<8x128xf32>
    %34 = tpu.matmul %32, %33, %cst_26 {dimension_numbers = #tpu.dot_dimension_numbers<[1], [0], [0], [1], [0, 0, 1, 1], [], []>} : vector<8x256xbf16>, vector<256x128xbf16>, vector<8x128xf32> -> vector<8x128xf32>
    %c0_27 = arith.constant 0 : index
    %c0_28 = arith.constant 0 : index
    %35 = vector.load %arg11[%c0_27, %c0_28] : memref<1x128xf32, #tpu.memory_space<vmem>>, vector<1x128xf32>
    %36 = vector.broadcast %35 : vector<1x128xf32> to vector<8x128xf32>
    %37 = arith.addf %34, %36 : vector<8x128xf32>
    %cst_29 = arith.constant 0.000000e+00 : f32
    %38 = vector.broadcast %cst_29 : f32 to vector<8x128xf32>
    %39 = arith.maximumf %37, %38 : vector<8x128xf32>
    %40 = math.absf %37 : vector<8x128xf32>
    %cst_30 = arith.constant 0.000000e+00 : f32
    %41 = vector.broadcast %cst_30 : f32 to vector<8x128xf32>
    %42 = arith.subf %41, %40 : vector<8x128xf32>
    %43 = math.exp %42 : vector<8x128xf32>
    %44 = math.log1p %43 : vector<8x128xf32>
    %45 = arith.addf %39, %44 : vector<8x128xf32>
    %cst_31 = arith.constant 1.000000e-07 : f32
    %46 = vector.broadcast %cst_31 : f32 to vector<8x128xf32>
    %47 = arith.addf %45, %46 : vector<8x128xf32>
    %48 = tpu.iota {dimensions = array<i32: 1>} : vector<8x128xi32>
    %c8_i32 = arith.constant 8 : i32
    %49 = vector.broadcast %c8_i32 : i32 to vector<8x128xi32>
    %50 = arith.cmpi slt, %48, %49 : vector<8x128xi32>
    %51 = arith.select %50, %37, %47 : vector<8x128xi1>, vector<8x128xf32>
    %c0_32 = arith.constant 0 : index
    %c0_33 = arith.constant 0 : index
    %52 = vector.load %arg12[%c0_32, %c0_33] : memref<8x128xf32, #tpu.memory_space<vmem>>, vector<8x128xf32>
    tpu.vector_store %arg12[%c0_32, %c0_33], %51 {strides = array<i32>} : memref<8x128xf32, #tpu.memory_space<vmem>>, vector<8x128xf32>,
    return
  }
  func.func @transform_0(%arg0: i32) -> (i32, i32) {
    %c0_i32 = arith.constant 0 : i32
    %c0_i32_0 = arith.constant 0 : i32
    return %arg0, %c0_i32 : i32, i32
  }
  func.func @transform_1(%arg0: i32) -> (i32, i32) {
    %c0_i32 = arith.constant 0 : i32
    %c0_i32_0 = arith.constant 0 : i32
    %c0_i32_1 = arith.constant 0 : i32
    return %c0_i32, %c0_i32_0 : i32, i32
  }
  func.func @transform_2(%arg0: i32) -> (i32, i32) {
    %c0_i32 = arith.constant 0 : i32
    %c0_i32_0 = arith.constant 0 : i32
    %c0_i32_1 = arith.constant 0 : i32
    return %c0_i32, %c0_i32_0 : i32, i32
  }
  func.func @transform_3(%arg0: i32) -> (i32, i32) {
    %c0_i32 = arith.constant 0 : i32
    %c0_i32_0 = arith.constant 0 : i32
    %c0_i32_1 = arith.constant 0 : i32
    return %c0_i32, %c0_i32_0 : i32, i32
  }
  func.func @transform_4(%arg0: i32) -> (i32, i32) {
    %c0_i32 = arith.constant 0 : i32
    %c0_i32_0 = arith.constant 0 : i32
    %c0_i32_1 = arith.constant 0 : i32
    return %c0_i32, %c0_i32_0 : i32, i32
  }
  func.func @transform_5(%arg0: i32) -> (i32, i32) {
    %c0_i32 = arith.constant 0 : i32
    %c0_i32_0 = arith.constant 0 : i32
    %c0_i32_1 = arith.constant 0 : i32
    return %c0_i32, %c0_i32_0 : i32, i32
  }
  func.func @transform_6(%arg0: i32) -> (i32, i32) {
    %c0_i32 = arith.constant 0 : i32
    %c0_i32_0 = arith.constant 0 : i32
    %c0_i32_1 = arith.constant 0 : i32
    return %c0_i32, %c0_i32_0 : i32, i32
  }
  func.func @transform_7(%arg0: i32) -> (i32, i32) {
    %c0_i32 = arith.constant 0 : i32
    %c0_i32_0 = arith.constant 0 : i32
    %c0_i32_1 = arith.constant 0 : i32
    return %c0_i32, %c0_i32_0 : i32, i32
  }
  func.func @transform_8(%arg0: i32) -> (i32, i32) {
    %c0_i32 = arith.constant 0 : i32
    %c0_i32_0 = arith.constant 0 : i32
    %c0_i32_1 = arith.constant 0 : i32
    return %c0_i32, %c0_i32_0 : i32, i32
  }
  func.func @transform_9(%arg0: i32) -> (i32, i32) {
    %c0_i32 = arith.constant 0 : i32
    %c0_i32_0 = arith.constant 0 : i32
    %c0_i32_1 = arith.constant 0 : i32
    return %c0_i32, %c0_i32_0 : i32, i32
  }
  func.func @transform_10(%arg0: i32) -> (i32, i32) {
    %c0_i32 = arith.constant 0 : i32
    %c0_i32_0 = arith.constant 0 : i32
    %c0_i32_1 = arith.constant 0 : i32
    return %c0_i32, %c0_i32_0 : i32, i32
  }
  func.func @transform_11(%arg0: i32) -> (i32, i32) {
    %c0_i32 = arith.constant 0 : i32
    %c0_i32_0 = arith.constant 0 : i32
    return %arg0, %c0_i32 : i32, i32
  }
}

module attributes {stable_mosaic.version = 11 : i64} {
  func.func @actor_kernel(%arg0: i32, %arg1: memref<8x32xbf16, #tpu.memory_space<vmem>>, %arg2: memref<32x256xbf16, #tpu.memory_space<vmem>>, %arg3: memref<1x256xf32, #tpu.memory_space<vmem>>, %arg4: memref<256x256xbf16, #tpu.memory_space<vmem>>, %arg5: memref<1x256xf32, #tpu.memory_space<vmem>>, %arg6: memref<256x256xbf16, #tpu.memory_space<vmem>>, %arg7: memref<1x256xf32, #tpu.memory_space<vmem>>, %arg8: memref<256x256xbf16, #tpu.memory_space<vmem>>, %arg9: memref<1x256xf32, #tpu.memory_space<vmem>>, %arg10: memref<256x128xbf16, #tpu.memory_space<vmem>>, %arg11: memref<1x128xf32, #tpu.memory_space<vmem>>, %arg12: memref<8x128xf32, #tpu.memory_space<vmem>>) attributes {dimension_semantics = [#tpu.dimension_semantics<parallel>], iteration_bounds = array<i64: 1>, scalar_prefetch = 0 : i64, scratch_operands = 0 : i64, tpu.core_type = #tpu.core_type<tc>, window_params = [{transform_indices = @transform_0, window_bounds = array<i64: 8, 32>}, {pipeline_mode = #tpu.pipeline_mode<synchronous>, transform_indices = @transform_1, window_bounds = array<i64: 32, 256>}, {pipeline_mode = #tpu.pipeline_mode<synchronous>, transform_indices = @transform_2, window_bounds = array<i64: 1, 256>}, {pipeline_mode = #tpu.pipeline_mode<synchronous>, transform_indices = @transform_3, window_bounds = array<i64: 256, 256>}, {pipeline_mode = #tpu.pipeline_mode<synchronous>, transform_indices = @transform_4, window_bounds = array<i64: 1, 256>}, {pipeline_mode = #tpu.pipeline_mode<synchronous>, transform_indices = @transform_5, window_bounds = array<i64: 256, 256>}, {pipeline_mode = #tpu.pipeline_mode<synchronous>, transform_indices = @transform_6, window_bounds = array<i64: 1, 256>}, {pipeline_mode = #tpu.pipeline_mode<synchronous>, transform_indices = @transform_7, window_bounds = array<i64: 256, 256>}, {pipeline_mode = #tpu.pipeline_mode<synchronous>, transform_indices = @transform_8, window_bounds = array<i64: 1, 256>}, {pipeline_mode = #tpu.pipeline_mode<synchronous>, transform_indices = @transform_9, window_bounds = array<i64: 256, 128>}, {pipeline_mode = #tpu.pipeline_mode<synchronous>, transform_indices = @transform_10, window_bounds = array<i64: 1, 128>}, {transform_indices = @transform_11, window_bounds = array<i64: 8, 128>}]} {
    %c0 = arith.constant 0 : index
    %c0_0 = arith.constant 0 : index
    %0 = vector.load %arg1[%c0, %c0_0] : memref<8x32xbf16, #tpu.memory_space<vmem>>, vector<8x32xbf16>
    %c0_1 = arith.constant 0 : index
    %c0_2 = arith.constant 0 : index
    %1 = vector.load %arg2[%c0_1, %c0_2] : memref<32x256xbf16, #tpu.memory_space<vmem>>, vector<32x256xbf16>
    %cst = arith.constant dense<0.000000e+00> : vector<8x256xf32>
    %2 = tpu.matmul %0, %1, %cst {dimension_numbers = #tpu.dot_dimension_numbers<[1], [0], [0], [1], [0, 0, 1, 1], [], []>} : vector<8x32xbf16>, vector<32x256xbf16>, vector<8x256xf32> -> vector<8x256xf32>
    %c0_3 = arith.constant 0 : index
    %c0_4 = arith.constant 0 : index
    %3 = vector.load %arg3[%c0_3, %c0_4] : memref<1x256xf32, #tpu.memory_space<vmem>>, vector<1x256xf32>
    %4 = vector.broadcast %3 : vector<1x256xf32> to vector<8x256xf32>
    %5 = arith.addf %2, %4 : vector<8x256xf32>
    %cst_5 = arith.constant 0.000000e+00 : f32
    %6 = vector.broadcast %cst_5 : f32 to vector<8x256xf32>
    %7 = arith.maximumf %5, %6 : vector<8x256xf32>
    %8 = arith.truncf %7 : vector<8x256xf32> to vector<8x256xbf16>
    %c0_6 = arith.constant 0 : index
    %c0_7 = arith.constant 0 : index
    %9 = vector.load %arg4[%c0_6, %c0_7] : memref<256x256xbf16, #tpu.memory_space<vmem>>, vector<256x256xbf16>
    %cst_8 = arith.constant dense<0.000000e+00> : vector<8x256xf32>
    %10 = tpu.matmul %8, %9, %cst_8 {dimension_numbers = #tpu.dot_dimension_numbers<[1], [0], [0], [1], [0, 0, 1, 1], [], []>} : vector<8x256xbf16>, vector<256x256xbf16>, vector<8x256xf32> -> vector<8x256xf32>
    %c0_9 = arith.constant 0 : index
    %c0_10 = arith.constant 0 : index
    %11 = vector.load %arg5[%c0_9, %c0_10] : memref<1x256xf32, #tpu.memory_space<vmem>>, vector<1x256xf32>
    %12 = vector.broadcast %11 : vector<1x256xf32> to vector<8x256xf32>
    %13 = arith.addf %10, %12 : vector<8x256xf32>
    %cst_11 = arith.constant 0.000000e+00 : f32
    %14 = vector.broadcast %cst_11 : f32 to vector<8x256xf32>
    %15 = arith.maximumf %13, %14 : vector<8x256xf32>
    %16 = arith.truncf %15 : vector<8x256xf32> to vector<8x256xbf16>
    %c0_12 = arith.constant 0 : index
    %c0_13 = arith.constant 0 : index
    %17 = vector.load %arg6[%c0_12, %c0_13] : memref<256x256xbf16, #tpu.memory_space<vmem>>, vector<256x256xbf16>
    %cst_14 = arith.constant dense<0.000000e+00> : vector<8x256xf32>
    %18 = tpu.matmul %16, %17, %cst_14 {dimension_numbers = #tpu.dot_dimension_numbers<[1], [0], [0], [1], [0, 0, 1, 1], [], []>} : vector<8x256xbf16>, vector<256x256xbf16>, vector<8x256xf32> -> vector<8x256xf32>
    %c0_15 = arith.constant 0 : index
    %c0_16 = arith.constant 0 : index
    %19 = vector.load %arg7[%c0_15, %c0_16] : memref<1x256xf32, #tpu.memory_space<vmem>>, vector<1x256xf32>
    %20 = vector.broadcast %19 : vector<1x256xf32> to vector<8x256xf32>
    %21 = arith.addf %18, %20 : vector<8x256xf32>
    %cst_17 = arith.constant 0.000000e+00 : f32
    %22 = vector.broadcast %cst_17 : f32 to vector<8x256xf32>
    %23 = arith.maximumf %21, %22 : vector<8x256xf32>
    %24 = arith.truncf %23 : vector<8x256xf32> to vector<8x256xbf16>
    %c0_18 = arith.constant 0 : index
    %c0_19 = arith.constant 0 : index
    %25 = vector.load %arg8[%c0_18, %c0_19] : memref<256x256xbf16, #tpu.memory_space<vmem>>, vector<256x256xbf16>
    %cst_20 = arith.constant dense<0.000000e+00> : vector<8x256xf32>
    %26 = tpu.matmul %24, %25, %cst_20 {dimension_numbers = #tpu.dot_dimension_numbers<[1], [0], [0], [1], [0, 0, 1, 1], [], []>} : vector<8x256xbf16>, vector<256x256xbf16>, vector<8x256xf32> -> vector<8x256xf32>
    %c0_21 = arith.constant 0 : index
    %c0_22 = arith.constant 0 : index
    %27 = vector.load %arg9[%c0_21, %c0_22] : memref<1x256xf32, #tpu.memory_space<vmem>>, vector<1x256xf32>
    %28 = vector.broadcast %27 : vector<1x256xf32> to vector<8x256xf32>
    %29 = arith.addf %26, %28 : vector<8x256xf32>
    %cst_23 = arith.constant 0.000000e+00 : f32
    %30 = vector.broadcast %cst_23 : f32 to vector<8x256xf32>
    %31 = arith.maximumf %29, %30 : vector<8x256xf32>
    %32 = arith.truncf %31 : vector<8x256xf32> to vector<8x256xbf16>
    %c0_24 = arith.constant 0 : index
    %c0_25 = arith.constant 0 : index
    %33 = vector.load %arg10[%c0_24, %c0_25] : memref<256x128xbf16, #tpu.memory_space<vmem>>, vector<256x128xbf16>
    %cst_26 = arith.constant dense<0.000000e+00> : vector<8x128xf32>
    %34 = tpu.matmul %32, %33, %cst_26 {dimension_numbers = #tpu.dot_dimension_numbers<[1], [0], [0], [1], [0, 0, 1, 1], [], []>} : vector<8x256xbf16>, vector<256x128xbf16>, vector<8x128xf32> -> vector<8x128xf32>
    %c0_27 = arith.constant 0 : index
    %c0_28 = arith.constant 0 : index
    %35 = vector.load %arg11[%c0_27, %c0_28] : memref<1x128xf32, #tpu.memory_space<vmem>>, vector<1x128xf32>
    %36 = vector.broadcast %35 : vector<1x128xf32> to vector<8x128xf32>
    %37 = arith.addf %34, %36 : vector<8x128xf32>
    %cst_29 = arith.constant 0.000000e+00 : f32
    %38 = vector.broadcast %cst_29 : f32 to vector<8x128xf32>
    %39 = arith.maximumf %37, %38 : vector<8x128xf32>
    %40 = math.absf %37 : vector<8x128xf32>
    %cst_30 = arith.constant 0.000000e+00 : f32
    %41 = vector.broadcast %cst_30 : f32 to vector<8x128xf32>
    %42 = arith.subf %41, %40 : vector<8x128xf32>
    %43 = math.exp %42 : vector<8x128xf32>
    %44 = math.log1p %43 : vector<8x128xf32>
    %45 = arith.addf %39, %44 : vector<8x128xf32>
    %cst_31 = arith.constant 1.000000e-07 : f32
    %46 = vector.broadcast %cst_31 : f32 to vector<8x128xf32>
    %47 = arith.addf %45, %46 : vector<8x128xf32>
    %48 = tpu.iota {dimensions = array<i32: 1>} : vector<8x128xi32>
    %c8_i32 = arith.constant 8 : i32
    %49 = vector.broadcast %c8_i32 : i32 to vector<8x128xi32>
    %50 = arith.cmpi slt, %48, %49 : vector<8x128xi32>
    %51 = arith.select %50, %37, %47 : vector<8x128xi1>, vector<8x128xf32>
    %c0_32 = arith.constant 0 : index
    %c0_33 = arith.constant 0 : index
    %52 = vector.load %arg12[%c0_32, %c0_33] : memref<8x128xf32, #tpu.memory_space<vmem>>, vector<8x128xf32>
    tpu.vector_store %arg12[%c0_32, %c0_33], %51 {strides = array<i32>} : memref<8x128xf32, #tpu.memory_space<vmem>>, vector<8x128xf32>,
    return
  }
  func.func @transform_0(%arg0: i32) -> (i32, i32) {
    %c0_i32 = arith.constant 0 : i32
    %c0_i32_0 = arith.constant 0 : i32
    return %arg0, %c0_i32 : i32, i32
  }
  func.func @transform_1(%arg0: i32) -> (i32, i32) {
    %c0_i32 = arith.constant 0 : i32
    %c0_i32_0 = arith.constant 0 : i32
    %c0_i32_1 = arith.constant 0 : i32
    return %c0_i32, %c0_i32_0 : i32, i32
  }
  func.func @transform_2(%arg0: i32) -> (i32, i32) {
    %c0_i32 = arith.constant 0 : i32
    %c0_i32_0 = arith.constant 0 : i32
    %c0_i32_1 = arith.constant 0 : i32
    return %c0_i32, %c0_i32_0 : i32, i32
  }
  func.func @transform_3(%arg0: i32) -> (i32, i32) {
    %c0_i32 = arith.constant 0 : i32
    %c0_i32_0 = arith.constant 0 : i32
    %c0_i32_1 = arith.constant 0 : i32
    return %c0_i32, %c0_i32_0 : i32, i32
  }
  func.func @transform_4(%arg0: i32) -> (i32, i32) {
    %c0_i32 = arith.constant 0 : i32
    %c0_i32_0 = arith.constant 0 : i32
    %c0_i32_1 = arith.constant 0 : i32
    return %c0_i32, %c0_i32_0 : i32, i32
  }
  func.func @transform_5(%arg0: i32) -> (i32, i32) {
    %c0_i32 = arith.constant 0 : i32
    %c0_i32_0 = arith.constant 0 : i32
    %c0_i32_1 = arith.constant 0 : i32
    return %c0_i32, %c0_i32_0 : i32, i32
  }
  func.func @transform_6(%arg0: i32) -> (i32, i32) {
    %c0_i32 = arith.constant 0 : i32
    %c0_i32_0 = arith.constant 0 : i32
    %c0_i32_1 = arith.constant 0 : i32
    return %c0_i32, %c0_i32_0 : i32, i32
  }
  func.func @transform_7(%arg0: i32) -> (i32, i32) {
    %c0_i32 = arith.constant 0 : i32
    %c0_i32_0 = arith.constant 0 : i32
    %c0_i32_1 = arith.constant 0 : i32
    return %c0_i32, %c0_i32_0 : i32, i32
  }
  func.func @transform_8(%arg0: i32) -> (i32, i32) {
    %c0_i32 = arith.constant 0 : i32
    %c0_i32_0 = arith.constant 0 : i32
    %c0_i32_1 = arith.constant 0 : i32
    return %c0_i32, %c0_i32_0 : i32, i32
  }
  func.func @transform_9(%arg0: i32) -> (i32, i32) {
    %c0_i32 = arith.constant 0 : i32
    %c0_i32_0 = arith.constant 0 : i32
    %c0_i32_1 = arith.constant 0 : i32
    return %c0_i32, %c0_i32_0 : i32, i32
  }
  func.func @transform_10(%arg0: i32) -> (i32, i32) {
    %c0_i32 = arith.constant 0 : i32
    %c0_i32_0 = arith.constant 0 : i32
    %c0_i32_1 = arith.constant 0 : i32
    return %c0_i32, %c0_i32_0 : i32, i32
  }
  func.func @transform_11(%arg0: i32) -> (i32, i32) {
    %c0_i32 = arith.constant 0 : i32
    %c0_i32_0 = arith.constant 0 : i32
    return %arg0, %c0_i32 : i32, i32
  }
}

</mosaic_0001>

<bundles_post_ra>
// kernel: tpu_custom_call.1
= control target key start
LH: loop header
LB: loop body
LE: loop exit
PB: predicated region body
PF: predicated region fallthrough
CT: control target
= control target key end

     0   :  { %16 = vsyncpa [#allocation3], 0  ;;  %s2094_s0 = inlined_call_operand.hbm [shape: bf16[8,32], index: 0, kind: input, shape index: {}]   ;;  %s2095_s1 = inlined_call_operand.hbm [shape: bf16[32,256], index: 1, kind: input, shape index: {}]   ;;  %s2096_s2 = inlined_call_operand.hbm [shape: f32[1,256], index: 2, kind: input, shape index: {}]   ;;  %s2097_s3 = inlined_call_operand.hbm [shape: bf16[256,256], index: 3, kind: input, shape index: {}]   ;;  %s2098_s4 = inlined_call_operand.vmem [shape: f32[1,256], index: 4, kind: input, shape index: {}]   ;;  %s2099_s5 = inlined_call_operand.hbm [shape: bf16[256,256], index: 5, kind: input, shape index: {}]   ;;  %s2100_s6 = inlined_call_operand.vmem [shape: f32[1,256], index: 6, kind: input, shape index: {}]   ;;  %s2101_s7 = inlined_call_operand.hbm [shape: bf16[256,256], index: 7, kind: input, shape index: {}]   ;;  %s2102_s8 = inlined_call_operand.vmem [shape: f32[1,256], index: 8, kind: input, shape index: {}]   ;;  %s2103_s9 = inlined_call_operand.hbm [shape: bf16[256,128], index: 9, kind: input, shape index: {}]   ;;  %s2104_s10 = inlined_call_operand.vmem [shape: f32[1,128], index: 10, kind: input, shape index: {}]   ;;  %s2105_s11 = inlined_call_operand.hbm [shape: f32[8,128], index: 11, kind: output, shape index: {}]  }
   0x1   :  { %17 = vsyncpa [#allocation6], 0 }
   0x2   :  { %18 = vsyncpa [#allocation9], 0 }
   0x3   :  { %19 = vsyncpa [#allocation12], 0  ;;  %s36_s19 = sshll.u32 %s2095_s1, 4  ;;  %s37_s19 = int_to_ptr.hbm [resolvable:$true] %s36_s19 }
   0x4   :  { %20 = vsyncpa [#allocation4], 0  ;;  %s1972_s20 = smov [#allocation5]   ;;  %s60_s24 = sshll.u32 %s2097_s3, 4  ;;  %s61_s24 = int_to_ptr.hbm [resolvable:$true] %s60_s24 }
   0x5   :  { %s38_s21 = sshll.u32 %s1972_s20, 4  ;;  %s1973_s25 = smov 128   ;;  %s39_s21 = int_to_ptr.vmem [resolvable:$true] %s38_s21 }
   0x6   :  { %s1974_s26 = smov 8   ;;  %s1975_s27 = smov [#allocation8]  }
   0x7   :  { %44 = dma.hbm_to_vmem [thread:$0]  %s37_s19, 512, %s39_s21, [#allocation6], %s1973_s25, %s1973_s25, %s1974_s26  }
   0x8   :  { %s62_s28 = sshll.u32 %s1975_s27, 4  ;;  %s90_s30 = sshll.u32 %s2101_s7, 4  ;;  %s63_s28 = int_to_ptr.vmem [resolvable:$true] %s62_s28  ;;  %s91_s30 = int_to_ptr.hbm [resolvable:$true] %s90_s30 }
   0x9   :  { %68 = dma.hbm_to_vmem [thread:$0]  %s61_s24, 4096, %s63_s28, [#allocation9], %s1973_s25, %s1973_s25, %s1974_s26  }
   0xa   :  { %s26_s13 = sshll.u32 %s2094_s0, 4  ;;  %s1976_s14 = smov [#allocation11]   ;;  %s27_s13 = int_to_ptr.hbm [resolvable:$true] %s26_s13 }
   0xb   :  { %s92_s15 = sshll.u32 %s1976_s14, 4  ;;  %s1977_s16 = smov [#allocation2]   ;;  %s93_s15 = int_to_ptr.vmem [resolvable:$true] %s92_s15 }
   0xc   :  { %98 = dma.hbm_to_vmem [thread:$0]  %s91_s30, 4096, %s93_s15, [#allocation12], %s1973_s25, %s1973_s25, %s1974_s26  }
   0xd   :  { %s28_s7 = sshll.u32 %s1977_s16, 4  ;;  %s50_s19 = sshll.u32 %s2096_s2, 4  ;;  %s29_s7 = int_to_ptr.vmem [resolvable:$true] %s28_s7  ;;  %s51_s19 = int_to_ptr.hbm [resolvable:$true] %s50_s19 }
   0xe   :  { %31 = dma.hbm_to_vmem [thread:$0]  %s27_s13, 64, %s29_s7, [#allocation3]  }
   0xf   :  { %s75_s0 = sshll.u32 %s2099_s5, 4  ;;  %s1978_s22 = smov [#allocation7]   ;;  %s76_s0 = int_to_ptr.hbm [resolvable:$true] %s75_s0 }
  0x10   :  { %s52_s23 = sshll.u32 %s1978_s22, 4  ;;  %s1979_s24 = smov [#allocation10]   ;;  %s53_s23 = int_to_ptr.vmem [resolvable:$true] %s52_s23 }
  0x11   :  { %55 = dma.hbm_to_vmem [thread:$0]  %s51_s19, 32, %s53_s23, [#allocation6]  }
  0x12   :  { %s77_s27 = sshll.u32 %s1979_s24, 4  ;;  %s105_s1 = sshll.u32 %s2103_s9, 4  ;;  %s78_s27 = int_to_ptr.vmem [resolvable:$true] %s77_s27  ;;  %s106_s1 = int_to_ptr.hbm [resolvable:$true] %s105_s1 }
  0x13   :  { %83 = dma.hbm_to_vmem [thread:$0]  %s76_s0, 4096, %s78_s27, [#allocation9], %s1973_s25, %s1973_s25, %s1974_s26  }
  0x14   :  { %s1980_s2 = smov [#allocation13]   ;;  %s1981_s5 = smov 64  }
  0x15   :  { %s107_s30 = sshll.u32 %s1980_s2, 4  ;;  %s1982_s3 = smov 4   ;;  %s108_s30 = int_to_ptr.vmem [resolvable:$true] %s107_s30 }
  0x16   :  { %113 = dma.hbm_to_vmem [thread:$0]  %s106_s1, 2048, %s108_s30, [#allocation12], %s1981_s5, %s1981_s5, %s1982_s3  }
  0x17   :  { %1962 = dma.done.wait [#allocation3], 64  }
  0x18   :  { %1963 = vsyncadd [#allocation3], 4294967232 }
  0x19   :  { %1964 = dma.done.wait [#allocation6], 544  }
  0x1a   :  { %1965 = vsyncadd [#allocation6], 4294966752 }
  0x1b   :  { %1966 = dma.done.wait [#allocation9], 8192  }
  0x1c   :  { %1967 = vsyncadd [#allocation9], 4294959104 }
  0x1d   :  { %1968 = dma.done.wait [#allocation12], 6144  }
  0x1e   :  { %1969 = vsyncadd [#allocation12], 4294961152  ;;  %v1181_v0 = vld [vmem:[#allocation5 + $0x10] sm:$0xf]  ;;  %v1640_v1 = vld [vmem:[#allocation5 + $0x14] sm:$0xf0] }
  0x1f   :  { %v1639_v2 = vld [vmem:[#allocation5 + $0x14] sm:$0xf]  ;;  %v1182_v3 = vor.u32 %v1640_v1, %v1181_v0  ;;  %v1183_v4 = vld [vmem:[#allocation5 + $0x18] sm:$0xf0]  ;;  %v1173_v5 = vld [vmem:[#allocation5] sm:$0xf] }
  0x20   :  { %v1638_v6 = vld [vmem:[#allocation5 + $0x4] sm:$0xf0]  ;;  %v1186_v7 = vor.u32 %v1639_v2, %v1183_v4  ;;  %v1637_v8 = vld [vmem:[#allocation5 + $0x4] sm:$0xf]  ;;  %v1175_v9 = vld [vmem:[#allocation5 + $0x8] sm:$0xf0] }
  0x21   :  { %vm176_vm0 = vcmask 261120   ;;  %186 = vmatpush.bf16.msra.mxu0 %v1182_v3  ;;  %v1174_v10 = vor.u32 %v1638_v6, %v1173_v5  ;;  %v1247_v11 = vld [vmem:[#allocation8 + $0x70] sm:$0xf]  ;;  %v1656_v12 = vld [vmem:[#allocation8 + $0x74] sm:$0xf0]  ;;  %v1178_v14 = vor.u32 %v1637_v8, %v1175_v9  ;;  %s1158_s7 = sshll.u32 %s2105_s11, 4  ;;  %s1159_s7 = int_to_ptr.hbm [resolvable:$true] %s1158_s7 }
  0x22   :  { %v1311_v13 = vld [vmem:[#allocation8 + $0xf0] sm:$0xf]  ;;  %199 = vmatpush.bf16.msra.mxu1 %v1186_v7  ;;  %v1248_v15 = vor.u32 %v1656_v12, %v1247_v11  ;;  %v1672_v16 = vld [vmem:[#allocation8 + $0xf4] sm:$0xf0]  ;;  %v1655_v17 = vld [vmem:[#allocation8 + $0x74] sm:$0xf] }
  0x23   :  { %v1249_v18 = vld [vmem:[#allocation8 + $0x78] sm:$0xf0]  ;;  %v1312_v20 = vor.u32 %v1672_v16, %v1311_v13  ;;  %v1671_v22 = vld [vmem:[#allocation8 + $0xf4] sm:$0xf]  ;;  %v1239_v24 = vld [vmem:[#allocation8 + $0x60] sm:$0xf] }
  0x24   :  { %v145_v19 = vld [vmem:[#allocation2] sm:$0xf]  ;;  %v1252_v21 = vor.u32 %v1655_v17, %v1249_v18  ;;  %408 = vmatpush.bf16.msra.mxu2 %v1248_v15  ;;  %v1654_v26 = vld [vmem:[#allocation8 + $0x64] sm:$0xf0]  ;;  %v1303_v27 = vld [vmem:[#allocation8 + $0xe0] sm:$0xf] }
  0x25   :  { %v1313_v23 = vld [vmem:[#allocation8 + $0xf8] sm:$0xf0]  ;;  %v1670_v28 = vld [vmem:[#allocation8 + $0xe4] sm:$0xf0]  ;;  %187 = vmatpush.bf16.msra.mxu0 %v1174_v10  ;;  %421 = vmatpush.bf16.msra.mxu3 %v1312_v20  ;;  %v1240_v29 = vor.u32 %v1654_v26, %v1239_v24  ;;  %v1653_v31 = vld [vmem:[#allocation8 + $0x64] sm:$0xf] }
  0x26   :  { %v1316_v25 = vor.u32 %v1671_v22, %v1313_v23  ;;  %v1304_v30 = vor.u32 %v1670_v28, %v1303_v27  ;;  %v1241_v32 = vld [vmem:[#allocation8 + $0x68] sm:$0xf0]  ;;  %v1669_v33 = vld [vmem:[#allocation8 + $0xe4] sm:$0xf]  ;;  %200 = vmatpush.bf16.msra.mxu1 %v1178_v14  ;;  %v1231_v36 = vld [vmem:[#allocation8 + $0x50] sm:$0xf] }
  0x27   :  { %v1244_v34 = vor.u32 %v1653_v31, %v1241_v32  ;;  %v1305_v35 = vld [vmem:[#allocation8 + $0xe8] sm:$0xf0]  ;;  %v1652_v37 = vld [vmem:[#allocation8 + $0x54] sm:$0xf0]  ;;  %v1295_v39 = vld [vmem:[#allocation8 + $0xd0] sm:$0xf] }
  0x28   :  { %v1308_v38 = vor.u32 %v1669_v33, %v1305_v35  ;;  %v1668_v40 = vld [vmem:[#allocation8 + $0xd4] sm:$0xf0]  ;;  %v1651_v41 = vld [vmem:[#allocation8 + $0x54] sm:$0xf]  ;;  %1187 = vmatmul.msk.bf16.vlgmr.msra.gmra.mxu0 %vm176_vm0, %v145_v19  ;;  %409 = vmatpush.bf16.msra.mxu2 %v1240_v29  ;;  %v1232_v42 = vor.u32 %v1652_v37, %v1231_v36  ;;  %v1233_v43 = vld [vmem:[#allocation8 + $0x58] sm:$0xf0] }
  0x29   :  { %434 = vmatpush.bf16.msrb.mxu0 %v1252_v21  ;;  %v1667_v44 = vld [vmem:[#allocation8 + $0xd4] sm:$0xf]  ;;  %v1297_v45 = vld [vmem:[#allocation8 + $0xd8] sm:$0xf0]  ;;  %1188 = vmatmul.msk.bf16.vlgmr.msra.gmra.mxu1 %vm176_vm0, %v145_v19  ;;  %v1296_v46 = vor.u32 %v1668_v40, %v1295_v39  ;;  %v1223_v47 = vld [vmem:[#allocation8 + $0x40] sm:$0xf]  ;;  %v1236_v49 = vor.u32 %v1651_v41, %v1233_v43 }
  0x2a   :  { %447 = vmatpush.bf16.msrb.mxu1 %v1316_v25  ;;  %422 = vmatpush.bf16.msra.mxu3 %v1304_v30  ;;  %v1650_v48 = vld [vmem:[#allocation8 + $0x44] sm:$0xf0]  ;;  %v1287_v50 = vld [vmem:[#allocation8 + $0xc0] sm:$0xf]  ;;  %v1300_v52 = vor.u32 %v1667_v44, %v1297_v45  ;;  %v1649_v53 = vld [vmem:[#allocation8 + $0x44] sm:$0xf] }
  0x2b   :  { %v1666_v51 = vld [vmem:[#allocation8 + $0xc4] sm:$0xf0]  ;;  %v1225_v54 = vld [vmem:[#allocation8 + $0x48] sm:$0xf0]  ;;  %v1224_v55 = vor.u32 %v1650_v48, %v1223_v47  ;;  %v1665_v56 = vld [vmem:[#allocation8 + $0xc4] sm:$0xf] }
  0x2c   :  { %410 = vmatpush.bf16.msra.mxu2 %v1232_v42  ;;  %v1289_v57 = vld [vmem:[#allocation8 + $0xc8] sm:$0xf0]  ;;  %v1288_v58 = vor.u32 %v1666_v51, %v1287_v50  ;;  %v1215_v59 = vld [vmem:[#allocation8 + $0x30] sm:$0xf]  ;;  %v1648_v60 = vld [vmem:[#allocation8 + $0x34] sm:$0xf0]  ;;  %v1228_v61 = vor.u32 %v1649_v53, %v1225_v54 }
  0x2d   :  { %435 = vmatpush.bf16.msrb.mxu0 %v1244_v34  ;;  %v1279_v62 = vld [vmem:[#allocation8 + $0xb0] sm:$0xf]  ;;  %v1664_v63 = vld [vmem:[#allocation8 + $0xb4] sm:$0xf0]  ;;  %v1292_v0 = vor.u32 %v1665_v56, %v1289_v57  ;;  %v1647_v1 = vld [vmem:[#allocation8 + $0x34] sm:$0xf]  ;;  %v1216_v3 = vor.u32 %v1648_v60, %v1215_v59 }
  0x2e   :  { %448 = vmatpush.bf16.msrb.mxu1 %v1308_v38  ;;  %423 = vmatpush.bf16.msra.mxu3 %v1296_v46  ;;  %v1217_v2 = vld [vmem:[#allocation8 + $0x38] sm:$0xf0]  ;;  %v1663_v4 = vld [vmem:[#allocation8 + $0xb4] sm:$0xf]  ;;  %v1280_v6 = vor.u32 %v1664_v63, %v1279_v62  ;;  %v1207_v7 = vld [vmem:[#allocation8 + $0x20] sm:$0xf] }
  0x2f   :  { %v1281_v5 = vld [vmem:[#allocation8 + $0xb8] sm:$0xf0]  ;;  %v1646_v8 = vld [vmem:[#allocation8 + $0x24] sm:$0xf0]  ;;  %v1220_v9 = vor.u32 %v1647_v1, %v1217_v2  ;;  %v1271_v10 = vld [vmem:[#allocation8 + $0xa0] sm:$0xf] }
  0x30   :  { %411 = vmatpush.bf16.msra.mxu2 %v1224_v55  ;;  %v1662_v11 = vld [vmem:[#allocation8 + $0xa4] sm:$0xf0]  ;;  %v1284_v12 = vor.u32 %v1663_v4, %v1281_v5  ;;  %v1645_v13 = vld [vmem:[#allocation8 + $0x24] sm:$0xf]  ;;  %v1209_v14 = vld [vmem:[#allocation8 + $0x28] sm:$0xf0]  ;;  %v1208_v15 = vor.u32 %v1646_v8, %v1207_v7 }
  0x31   :  { %436 = vmatpush.bf16.msrb.mxu0 %v1236_v49  ;;  %v1661_v16 = vld [vmem:[#allocation8 + $0xa4] sm:$0xf]  ;;  %v1273_v17 = vld [vmem:[#allocation8 + $0xa8] sm:$0xf0]  ;;  %v1272_v18 = vor.u32 %v1662_v11, %v1271_v10  ;;  %v1212_v19 = vor.u32 %v1645_v13, %v1209_v14  ;;  %v1199_v21 = vld [vmem:[#allocation8 + $0x10] sm:$0xf] }
  0x32   :  { %449 = vmatpush.bf16.msrb.mxu1 %v1300_v52  ;;  %424 = vmatpush.bf16.msra.mxu3 %v1288_v58  ;;  %v1276_v20 = vor.u32 %v1661_v16, %v1273_v17  ;;  %v1644_v22 = vld [vmem:[#allocation8 + $0x14] sm:$0xf0]  ;;  %v1263_v23 = vld [vmem:[#allocation8 + $0x90] sm:$0xf]  ;;  %v1643_v26 = vld [vmem:[#allocation8 + $0x14] sm:$0xf] }
  0x33   :  { %v1200_v24 = vor.u32 %v1644_v22, %v1199_v21  ;;  %v1660_v25 = vld [vmem:[#allocation8 + $0x94] sm:$0xf0]  ;;  %v1201_v27 = vld [vmem:[#allocation8 + $0x18] sm:$0xf0]  ;;  %v1659_v30 = vld [vmem:[#allocation8 + $0x94] sm:$0xf] }
  0x34   :  { %412 = vmatpush.bf16.msra.mxu2 %v1216_v3  ;;  %v1264_v28 = vor.u32 %v1660_v25, %v1263_v23  ;;  %v1204_v29 = vor.u32 %v1643_v26, %v1201_v27  ;;  %v1265_v31 = vld [vmem:[#allocation8 + $0x98] sm:$0xf0]  ;;  %v1191_v33 = vld [vmem:[#allocation8] sm:$0xf]  ;;  %v1642_v34 = vld [vmem:[#allocation8 + $0x4] sm:$0xf0] }
  0x35   :  { %437 = vmatpush.bf16.msrb.mxu0 %v1228_v61  ;;  %v1268_v32 = vor.u32 %v1659_v30, %v1265_v31  ;;  %v1255_v35 = vld [vmem:[#allocation8 + $0x80] sm:$0xf]  ;;  %v1192_v36 = vor.u32 %v1642_v34, %v1191_v33  ;;  %v1658_v37 = vld [vmem:[#allocation8 + $0x84] sm:$0xf0]  ;;  %v1641_v38 = vld [vmem:[#allocation8 + $0x4] sm:$0xf] }
  0x36   :  { %450 = vmatpush.bf16.msrb.mxu1 %v1292_v0  ;;  %425 = vmatpush.bf16.msra.mxu3 %v1280_v6  ;;  %v1193_v39 = vld [vmem:[#allocation8 + $0x8] sm:$0xf0]  ;;  %v1256_v40 = vor.u32 %v1658_v37, %v1255_v35  ;;  %v1657_v42 = vld [vmem:[#allocation8 + $0x84] sm:$0xf]  ;;  %v1439_v45 = vld [vmem:[#allocation10 + $0xf0] sm:$0xf] }
  0x37   :  { %v1196_v41 = vor.u32 %v1641_v38, %v1193_v39  ;;  %v1257_v43 = vld [vmem:[#allocation8 + $0x88] sm:$0xf0]  ;;  %v1704_v46 = vld [vmem:[#allocation10 + $0xf4] sm:$0xf0]  ;;  %v1703_v47 = vld [vmem:[#allocation10 + $0xf4] sm:$0xf] }
  0x38   :  { %413 = vmatpush.bf16.msra.mxu2 %v1208_v15  ;;  %v1260_v44 = vor.u32 %v1657_v42, %v1257_v43  ;;  %v1440_v48 = vor.u32 %v1704_v46, %v1439_v45  ;;  %v1441_v49 = vld [vmem:[#allocation10 + $0xf8] sm:$0xf0]  ;;  %v1431_v50 = vld [vmem:[#allocation10 + $0xe0] sm:$0xf]  ;;  %v1702_v51 = vld [vmem:[#allocation10 + $0xe4] sm:$0xf0] }
  0x39   :  { %438 = vmatpush.bf16.msrb.mxu0 %v1220_v9  ;;  %v1444_v52 = vor.u32 %v1703_v47, %v1441_v49  ;;  %v1701_v53 = vld [vmem:[#allocation10 + $0xe4] sm:$0xf]  ;;  %v1433_v54 = vld [vmem:[#allocation10 + $0xe8] sm:$0xf0]  ;;  %v1375_v55 = vld [vmem:[#allocation10 + $0x70] sm:$0xf]  ;;  %v1432_v56 = vor.u32 %v1702_v51, %v1431_v50 }
  0x3a   :  { %451 = vmatpush.bf16.msrb.mxu1 %v1284_v12  ;;  %426 = vmatpush.bf16.msra.mxu3 %v1272_v18  ;;  %v1688_v57 = vld [vmem:[#allocation10 + $0x74] sm:$0xf0]  ;;  %v1687_v58 = vld [vmem:[#allocation10 + $0x74] sm:$0xf]  ;;  %v1377_v59 = vld [vmem:[#allocation10 + $0x78] sm:$0xf0]  ;;  %v1436_v60 = vor.u32 %v1701_v53, %v1433_v54 }
  0x3b   :  { %v1376_v61 = vor.u32 %v1688_v57, %v1375_v55  ;;  %v1380_v62 = vor.u32 %v1687_v58, %v1377_v59  ;;  %v1423_v63 = vld [vmem:[#allocation10 + $0xd0] sm:$0xf]  ;;  %v1700_v0 = vld [vmem:[#allocation10 + $0xd4] sm:$0xf0]  ;;  %v1699_v1 = vld [vmem:[#allocation10 + $0xd4] sm:$0xf] }
  0x3c   :  { %414 = vmatpush.bf16.msra.mxu2 %v1200_v24  ;;  %v1425_v2 = vld [vmem:[#allocation10 + $0xd8] sm:$0xf0]  ;;  %v1367_v3 = vld [vmem:[#allocation10 + $0x60] sm:$0xf]  ;;  %v1686_v4 = vld [vmem:[#allocation10 + $0x64] sm:$0xf0]  ;;  %v1424_v8 = vor.u32 %v1700_v0, %v1423_v63 }
  0x3d   :  { %439 = vmatpush.bf16.msrb.mxu0 %v1212_v19  ;;  %v1368_v5 = vor.u32 %v1686_v4, %v1367_v3  ;;  %v1685_v6 = vld [vmem:[#allocation10 + $0x64] sm:$0xf]  ;;  %v1369_v7 = vld [vmem:[#allocation10 + $0x68] sm:$0xf0]  ;;  %v1415_v10 = vld [vmem:[#allocation10 + $0xc0] sm:$0xf]  ;;  %v1428_v12 = vor.u32 %v1699_v1, %v1425_v2 }
  0x3e   :  { %452 = vmatpush.bf16.msrb.mxu1 %v1276_v20  ;;  %427 = vmatpush.bf16.msra.mxu3 %v1264_v28  ;;  %v1372_v9 = vor.u32 %v1685_v6, %v1369_v7  ;;  %v1698_v11 = vld [vmem:[#allocation10 + $0xc4] sm:$0xf0]  ;;  %v1359_v13 = vld [vmem:[#allocation10 + $0x50] sm:$0xf]  ;;  %v1684_v14 = vld [vmem:[#allocation10 + $0x54] sm:$0xf0] }
  0x3f   :  { %v1683_v15 = vld [vmem:[#allocation10 + $0x54] sm:$0xf]  ;;  %v1697_v16 = vld [vmem:[#allocation10 + $0xc4] sm:$0xf]  ;;  %v1417_v17 = vld [vmem:[#allocation10 + $0xc8] sm:$0xf0]  ;;  %v1360_v19 = vor.u32 %v1684_v14, %v1359_v13  ;;  %v1416_v22 = vor.u32 %v1698_v11, %v1415_v10 }
  0x40   :  { %415 = vmatpush.bf16.msra.mxu2 %v1192_v36  ;;  %v1361_v18 = vld [vmem:[#allocation10 + $0x58] sm:$0xf0]  ;;  %v1351_v21 = vld [vmem:[#allocation10 + $0x40] sm:$0xf]  ;;  %v1682_v23 = vld [vmem:[#allocation10 + $0x44] sm:$0xf0]  ;;  %v1420_v26 = vor.u32 %v1697_v16, %v1417_v17 }
  0x41   :  { %440 = vmatpush.bf16.msrb.mxu0 %v1204_v29  ;;  %v1364_v20 = vor.u32 %v1683_v15, %v1361_v18  ;;  %v1681_v24 = vld [vmem:[#allocation10 + $0x44] sm:$0xf]  ;;  %v1353_v25 = vld [vmem:[#allocation10 + $0x48] sm:$0xf0]  ;;  %v1407_v27 = vld [vmem:[#allocation10 + $0xb0] sm:$0xf]  ;;  %v1352_v31 = vor.u32 %v1682_v23, %v1351_v21 }
  0x42   :  { %453 = vmatpush.bf16.msrb.mxu1 %v1268_v32  ;;  %428 = vmatpush.bf16.msra.mxu3 %v1256_v40  ;;  %v1696_v28 = vld [vmem:[#allocation10 + $0xb4] sm:$0xf0]  ;;  %v1695_v29 = vld [vmem:[#allocation10 + $0xb4] sm:$0xf]  ;;  %v1409_v30 = vld [vmem:[#allocation10 + $0xb8] sm:$0xf0]  ;;  %v1356_v32 = vor.u32 %v1681_v24, %v1353_v25 }
  0x43   :  { %v1408_v33 = vor.u32 %v1696_v28, %v1407_v27  ;;  %v1412_v34 = vor.u32 %v1695_v29, %v1409_v30  ;;  %v1399_v35 = vld [vmem:[#allocation10 + $0xa0] sm:$0xf]  ;;  %v1694_v36 = vld [vmem:[#allocation10 + $0xa4] sm:$0xf0]  ;;  %v150_v37 = vld [vmem:[#allocation7] sm:$0x3] }
  0x44   :  { %662 = vmatpush.bf16.msrb.mxu2 %v1376_v61  ;;  %v1693_v38 = vld [vmem:[#allocation10 + $0xa4] sm:$0xf]  ;;  %v1401_v39 = vld [vmem:[#allocation10 + $0xa8] sm:$0xf0]  ;;  %v1400_v40 = vor.u32 %v1694_v36, %v1399_v35  ;;  %v153_v43 = vperm.slane %v150_v37, 1 }
  0x45   :  { %441 = vmatpush.bf16.msrb.mxu0 %v1196_v41  ;;  %v152_v41 = vperm.slane %v150_v37, 0  ;;  %v1404_v42 = vor.u32 %v1693_v38, %v1401_v39  ;;  %v1343_v54 = vld [vmem:[#allocation10 + $0x30] sm:$0xf]  ;;  %v1680_v55 = vld [vmem:[#allocation10 + $0x34] sm:$0xf0] }
  0x46   :  { %454 = vmatpush.bf16.msrb.mxu1 %v1260_v44  ;;  %675 = vmatpush.bf16.msrb.mxu3 %v1440_v48  ;;  %v1344_v57 = vor.u32 %v1680_v55, %v1343_v54  ;;  %v1345_v58 = vld [vmem:[#allocation10 + $0x38] sm:$0xf0]  ;;  %v1692_v61 = vld [vmem:[#allocation10 + $0x94] sm:$0xf0]  ;;  %v1335_v2 = vld [vmem:[#allocation10 + $0x20] sm:$0xf] }
  0x47   :  { %v1393_v0 = vld [vmem:[#allocation10 + $0x98] sm:$0xf0]  ;;  %v1678_v3 = vld [vmem:[#allocation10 + $0x24] sm:$0xf0]  ;;  %v1677_v4 = vld [vmem:[#allocation10 + $0x24] sm:$0xf] }
  0x48   :  { %663 = vmatpush.bf16.msrb.mxu2 %v1368_v5  ;;  %v1336_v5 = vor.u32 %v1678_v3, %v1335_v2  ;;  %v1337_v6 = vld [vmem:[#allocation10 + $0x28] sm:$0xf0]  ;;  %v1689_v10 = vld [vmem:[#allocation10 + $0x84] sm:$0xf]  ;;  %v1327_v14 = vld [vmem:[#allocation10 + $0x10] sm:$0xf] }
  0x49   :  { %688 = vmatpush.bf16.msra.mxu0 %v1380_v62  ;;  %v1691_v62 = vld [vmem:[#allocation10 + $0x94] sm:$0xf]  ;;  %v1340_v7 = vor.u32 %v1677_v4, %v1337_v6  ;;  %v1676_v15 = vld [vmem:[#allocation10 + $0x14] sm:$0xf0]  ;;  %v1329_v18 = vld [vmem:[#allocation10 + $0x18] sm:$0xf0] }
  0x4a   :  { %701 = vmatpush.bf16.msra.mxu1 %v1444_v52  ;;  %676 = vmatpush.bf16.msrb.mxu3 %v1432_v56  ;;  %v1679_v56 = vld [vmem:[#allocation10 + $0x34] sm:$0xf]  ;;  %v1396_v1 = vor.u32 %v1691_v62, %v1393_v0  ;;  %v1328_v16 = vor.u32 %v1676_v15, %v1327_v14  ;;  %v1674_v21 = vld [vmem:[#allocation10 + $0x4] sm:$0xf0]  ;;  %v1321_v24 = vld [vmem:[#allocation10 + $0x8] sm:$0xf0] }
  0x4b   :  { %v1348_v59 = vor.u32 %v1679_v56, %v1345_v58  ;;  %v1675_v17 = vld [vmem:[#allocation10 + $0x14] sm:$0xf]  ;;  %v1736_v27 = vld [vmem:[#allocation11 + $0xf4] sm:$0xf0]  ;;  %v1569_v30 = vld [vmem:[#allocation11 + $0xf8] sm:$0xf0] }
  0x4c   :  { %664 = vmatpush.bf16.msrb.mxu2 %v1360_v19  ;;  %v1332_v19 = vor.u32 %v1675_v17, %v1329_v18  ;;  %v1735_v28 = vld [vmem:[#allocation11 + $0xf4] sm:$0xf]  ;;  %v1561_v35 = vld [vmem:[#allocation11 + $0xe8] sm:$0xf0]  ;;  %v1503_v36 = vld [vmem:[#allocation11 + $0x70] sm:$0xf] }
  0x4d   :  { %689 = vmatpush.bf16.msra.mxu0 %v1372_v9  ;;  %v1690_v9 = vld [vmem:[#allocation10 + $0x84] sm:$0xf0]  ;;  %v1720_v38 = vld [vmem:[#allocation11 + $0x74] sm:$0xf0]  ;;  %v1719_v39 = vld [vmem:[#allocation11 + $0x74] sm:$0xf] }
  0x4e   :  { %702 = vmatpush.bf16.msra.mxu1 %v1436_v60  ;;  %677 = vmatpush.bf16.msrb.mxu3 %v1424_v8  ;;  %v1391_v60 = vld [vmem:[#allocation10 + $0x90] sm:$0xf]  ;;  %v1383_v8 = vld [vmem:[#allocation10 + $0x80] sm:$0xf]  ;;  %v1730_v56 = vld [vmem:[#allocation11 + $0xc4] sm:$0xf0] }
  0x4f   :  { %v1392_v63 = vor.u32 %v1692_v61, %v1391_v60  ;;  %v1384_v11 = vor.u32 %v1690_v9, %v1383_v8  ;;  %v1543_v55 = vld [vmem:[#allocation11 + $0xc0] sm:$0xf]  ;;  %v1487_v58 = vld [vmem:[#allocation11 + $0x50] sm:$0xf]  ;;  %v1715_v60 = vld [vmem:[#allocation11 + $0x54] sm:$0xf] }
  0x50   :  { %665 = vmatpush.bf16.msrb.mxu2 %v1352_v31  ;;  %v1559_v31 = vld [vmem:[#allocation11 + $0xe0] sm:$0xf]  ;;  %v1729_v61 = vld [vmem:[#allocation11 + $0xc4] sm:$0xf]  ;;  %v1545_v62 = vld [vmem:[#allocation11 + $0xc8] sm:$0xf0]  ;;  %v1544_v3 = vor.u32 %v1730_v56, %v1543_v55 }
  0x51   :  { %690 = vmatpush.bf16.msra.mxu0 %v1364_v20  ;;  %v1319_v20 = vld [vmem:[#allocation10] sm:$0xf]  ;;  %v242_v2 = vld [vmem:[%s2098_s4] sm:$0x3]  ;;  %v1548_v4 = vor.u32 %v1729_v61, %v1545_v62  ;;  %v1709_v55 = vld [vmem:[#allocation11 + $0x24] sm:$0xf] }
  0x52   :  { %703 = vmatpush.bf16.msra.mxu1 %v1428_v12  ;;  %678 = vmatpush.bf16.msrb.mxu3 %v1416_v22  ;;  %v1385_v12 = vld [vmem:[#allocation10 + $0x88] sm:$0xf0]  ;;  %v1673_v22 = vld [vmem:[#allocation10 + $0x4] sm:$0xf]  ;;  %v1320_v23 = vor.u32 %v1674_v21, %v1319_v20 }
  0x53   :  { %v1388_v13 = vor.u32 %v1689_v10, %v1385_v12  ;;  %v1324_v25 = vor.u32 %v1673_v22, %v1321_v24  ;;  %v244_v10 = vperm.slane %v242_v2, 0  ;;  %v1728_v24 = vld [vmem:[#allocation11 + $0xb4] sm:$0xf0]  ;;  %v1721_v61 = vld [vmem:[#allocation11 + $0x84] sm:$0xf] }
  0x54   :  { %666 = vmatpush.bf16.msrb.mxu2 %v1344_v57 }
  0x55   :  { %691 = vmatpush.bf16.msra.mxu0 %v1356_v32  ;;  %v1734_v32 = vld [vmem:[#allocation11 + $0xe4] sm:$0xf0] }
  0x56   :  { %704 = vmatpush.bf16.msra.mxu1 %v1420_v26  ;;  %679 = vmatpush.bf16.msrb.mxu3 %v1408_v33  ;;  %v1567_v26 = vld [vmem:[#allocation11 + $0xf0] sm:$0xf]  ;;  %v1572_v33 = vor.u32 %v1735_v28, %v1569_v30  ;;  %v1560_v37 = vor.u32 %v1734_v32, %v1559_v31  ;;  %v1714_v30 = vld [vmem:[#allocation11 + $0x44] sm:$0xf0]  ;;  %v1713_v31 = vld [vmem:[#allocation11 + $0x44] sm:$0xf] }
  0x57   :  { %v1568_v29 = vor.u32 %v1736_v27, %v1567_v26  ;;  %v1537_v27 = vld [vmem:[#allocation11 + $0xb8] sm:$0xf0] }
  0x58   :  { %667 = vmatpush.bf16.msrb.mxu2 %v1336_v5  ;;  %v245_v5 = vperm.slane %v242_v2, 1  ;;  %v1708_v2 = vld [vmem:[#allocation11 + $0x14] sm:$0xf0] }
  0x59   :  { %692 = vmatpush.bf16.msra.mxu0 %v1348_v59  ;;  %v1716_v59 = vld [vmem:[#allocation11 + $0x54] sm:$0xf0] }
  0x5a   :  { %705 = vmatpush.bf16.msra.mxu1 %v1412_v34  ;;  %680 = vmatpush.bf16.msrb.mxu3 %v1400_v40  ;;  %v1733_v34 = vld [vmem:[#allocation11 + $0xe4] sm:$0xf]  ;;  %v1505_v40 = vld [vmem:[#allocation11 + $0x78] sm:$0xf0]  ;;  %v1488_v0 = vor.u32 %v1716_v59, %v1487_v58  ;;  %v1511_v59 = vld [vmem:[#allocation11 + $0x80] sm:$0xf] }
  0x5c   :  { %668 = vmatpush.bf16.msrb.mxu2 %v1328_v16 }
  0x5d   :  { %693 = vmatpush.bf16.msra.mxu0 %v1340_v7 }
  0x5e   :  { %706 = vmatpush.bf16.msra.mxu1 %v1404_v42  ;;  %681 = vmatpush.bf16.msrb.mxu3 %v1392_v63  ;;  %v1504_v42 = vor.u32 %v1720_v38, %v1503_v36  ;;  %v1489_v63 = vld [vmem:[#allocation11 + $0x58] sm:$0xf0]  ;;  %v1725_v38 = vld [vmem:[#allocation11 + $0xa4] sm:$0xf] }
  0x60   :  { %669 = vmatpush.bf16.msrb.mxu2 %v1320_v23  ;;  %v1535_v23 = vld [vmem:[#allocation11 + $0xb0] sm:$0xf] }
  0x61   :  { %694 = vmatpush.bf16.msra.mxu0 %v1332_v19  ;;  %v1536_v26 = vor.u32 %v1728_v24, %v1535_v23 }
  0x62   :  { %707 = vmatpush.bf16.msra.mxu1 %v1396_v1  ;;  %682 = vmatpush.bf16.msrb.mxu3 %v1384_v11  ;;  %v1492_v1 = vor.u32 %v1715_v60, %v1489_v63  ;;  %v1722_v60 = vld [vmem:[#allocation11 + $0x84] sm:$0xf0]  ;;  %v1513_v63 = vld [vmem:[#allocation11 + $0x88] sm:$0xf0] }
  0x63   :  { %v1512_v62 = vor.u32 %v1722_v60, %v1511_v59 }
  0x65   :  { %695 = vmatpush.bf16.msra.mxu0 %v1324_v25  ;;  %v1727_v25 = vld [vmem:[#allocation11 + $0xb4] sm:$0xf] }
  0x66   :  { %708 = vmatpush.bf16.msra.mxu1 %v1388_v13  ;;  %v1540_v28 = vor.u32 %v1727_v25, %v1537_v27 }
  0xa5   :  { %v189_v44 = vpop.f32.mrf.mxu0 }
  0xa6   :  { %v190_v45 = vadd.f32 %v189_v44, %v152_v41  ;;  %v202_v46 = vpop.f32.mrf.mxu1  ;;  %v1564_v41 = vor.u32 %v1733_v34, %v1561_v35  ;;  %v1551_v44 = vld [vmem:[#allocation11 + $0xd0] sm:$0xf]  ;;  %v1527_v34 = vld [vmem:[#allocation11 + $0xa0] sm:$0xf]  ;;  %v1726_v35 = vld [vmem:[#allocation11 + $0xa4] sm:$0xf0] }
  0xa7   :  { %v203_v47 = vadd.f32 %v202_v46, %v153_v43  ;;  %v1508_v43 = vor.u32 %v1719_v39, %v1505_v40  ;;  %v1731_v46 = vld [vmem:[#allocation11 + $0xd4] sm:$0xf]  ;;  %v1529_v39 = vld [vmem:[#allocation11 + $0xa8] sm:$0xf0] }
  0xa8   :  { %v206_v48 = vmax.f32 %v190_v45, 0.0  ;;  %v1732_v45 = vld [vmem:[#allocation11 + $0xd4] sm:$0xf0]  ;;  %v1532_v40 = vor.u32 %v1725_v38, %v1529_v39 }
  0xa9   :  { %v207_v49 = vmax.f32 %v203_v47, 0.0  ;;  %v1553_v47 = vld [vmem:[#allocation11 + $0xd8] sm:$0xf0] }
  0xaa   :  { %v208_v50 = vpack.c.bf16 %v206_v48, %v206_v48  ;;  %v1495_v48 = vld [vmem:[#allocation11 + $0x60] sm:$0xf]  ;;  %v1556_v57 = vor.u32 %v1731_v46, %v1553_v47  ;;  %v1519_v47 = vld [vmem:[#allocation11 + $0x90] sm:$0xf]  ;;  %v1748_v39 = vld [vmem:[#allocation13 + $0x58] sm:$0xff] }
  0xab   :  { %v209_v51 = vpack.c.bf16 %v207_v49, %v207_v49  ;;  %v1718_v49 = vld [vmem:[#allocation11 + $0x64] sm:$0xf0] }
  0xac   :  { %416 = vmatmul.bf16.vlgmr.msra.gmra.mxu2 %v208_v50  ;;  %442 = vmatmul.bf16.vlgmr.msrb.gmra.mxu0 %v208_v50  ;;  %v1496_v50 = vor.u32 %v1718_v49, %v1495_v48  ;;  %v1724_v48 = vld [vmem:[#allocation11 + $0x94] sm:$0xf0] }
  0xad   :  { %429 = vmatmul.bf16.vlgmr.msra.gmra.mxu3 %v209_v51  ;;  %455 = vmatmul.bf16.vlgmr.msrb.gmra.mxu1 %v209_v51  ;;  %v191_v52 = vpop.f32.mrf.mxu0  ;;  %v1717_v51 = vld [vmem:[#allocation11 + $0x64] sm:$0xf]  ;;  %v1520_v49 = vor.u32 %v1724_v48, %v1519_v47 }
  0xae   :  { %v204_v53 = vpop.f32.mrf.mxu1  ;;  %929 = vmatpush.bf16.msra.mxu3 %v1568_v29  ;;  %955 = vmatpush.bf16.msrb.mxu1 %v1572_v33  ;;  %v1497_v52 = vld [vmem:[#allocation11 + $0x68] sm:$0xf0]  ;;  %v1479_v29 = vld [vmem:[#allocation11 + $0x40] sm:$0xf] }
  0xaf   :  { %916 = vmatpush.bf16.msra.mxu2 %v1504_v42  ;;  %942 = vmatpush.bf16.msrb.mxu0 %v1508_v43  ;;  %v1552_v53 = vor.u32 %v1732_v45, %v1551_v44  ;;  %v1500_v54 = vor.u32 %v1717_v51, %v1497_v52  ;;  %v1480_v32 = vor.u32 %v1714_v30, %v1479_v29  ;;  %v1481_v33 = vld [vmem:[#allocation11 + $0x48] sm:$0xf0]  ;;  %v1712_v42 = vld [vmem:[#allocation11 + $0x34] sm:$0xf0]  ;;  %v1711_v43 = vld [vmem:[#allocation11 + $0x34] sm:$0xf] }
  0xb0   :  { %v1484_v36 = vor.u32 %v1713_v31, %v1481_v33  ;;  %v1473_v45 = vld [vmem:[#allocation11 + $0x38] sm:$0xf0]  ;;  %v1737_v47 = vld [vmem:[#allocation13] sm:$0xff] }
  0xb1   :  { %v1476_v46 = vor.u32 %v1711_v43, %v1473_v45  ;;  %v1521_v51 = vld [vmem:[#allocation11 + $0x98] sm:$0xf0]  ;;  %v1746_v43 = vld [vmem:[#allocation13 + $0x48] sm:$0xff]  ;;  %v1745_v45 = vld [vmem:[#allocation13 + $0x40] sm:$0xff] }
  0xb2   :  { %930 = vmatpush.bf16.msra.mxu3 %v1560_v37  ;;  %956 = vmatpush.bf16.msrb.mxu1 %v1564_v41  ;;  %v1528_v37 = vor.u32 %v1726_v35, %v1527_v34  ;;  %v1471_v41 = vld [vmem:[#allocation11 + $0x30] sm:$0xf] }
  0xb3   :  { %917 = vmatpush.bf16.msra.mxu2 %v1496_v50  ;;  %943 = vmatpush.bf16.msrb.mxu0 %v1500_v54  ;;  %v1472_v44 = vor.u32 %v1712_v42, %v1471_v41  ;;  %v1723_v50 = vld [vmem:[#allocation11 + $0x94] sm:$0xf]  ;;  %v1710_v54 = vld [vmem:[#allocation11 + $0x24] sm:$0xf0]  ;;  %v1740_v42 = vld [vmem:[#allocation13 + $0x18] sm:$0xff] }
  0xb4   :  { %v1524_v52 = vor.u32 %v1723_v50, %v1521_v51  ;;  %v1747_v41 = vld [vmem:[#allocation13 + $0x50] sm:$0xff] }
  0xb6   :  { %931 = vmatpush.bf16.msra.mxu3 %v1552_v53  ;;  %957 = vmatpush.bf16.msrb.mxu1 %v1556_v57  ;;  %v1463_v53 = vld [vmem:[#allocation11 + $0x20] sm:$0xf]  ;;  %v1465_v57 = vld [vmem:[#allocation11 + $0x28] sm:$0xf0] }
  0xb7   :  { %918 = vmatpush.bf16.msra.mxu2 %v1488_v0  ;;  %944 = vmatpush.bf16.msrb.mxu0 %v1492_v1  ;;  %v1464_v56 = vor.u32 %v1710_v54, %v1463_v53  ;;  %v1468_v58 = vor.u32 %v1709_v55, %v1465_v57  ;;  %v1516_v0 = vor.u32 %v1721_v61, %v1513_v63  ;;  %v1455_v1 = vld [vmem:[#allocation11 + $0x10] sm:$0xf] }
  0xba   :  { %932 = vmatpush.bf16.msra.mxu3 %v1544_v3  ;;  %958 = vmatpush.bf16.msrb.mxu1 %v1548_v4  ;;  %v1456_v3 = vor.u32 %v1708_v2, %v1455_v1  ;;  %v1707_v4 = vld [vmem:[#allocation11 + $0x14] sm:$0xf] }
  0xbb   :  { %919 = vmatpush.bf16.msra.mxu2 %v1480_v32  ;;  %945 = vmatpush.bf16.msrb.mxu0 %v1484_v36 }
  0xbe   :  { %933 = vmatpush.bf16.msra.mxu3 %v1536_v26  ;;  %959 = vmatpush.bf16.msrb.mxu1 %v1540_v28 }
  0xbf   :  { %920 = vmatpush.bf16.msra.mxu2 %v1472_v44  ;;  %946 = vmatpush.bf16.msrb.mxu0 %v1476_v46  ;;  %v1739_v44 = vld [vmem:[#allocation13 + $0x10] sm:$0xff]  ;;  %v1738_v46 = vld [vmem:[#allocation13 + $0x8] sm:$0xff] }
  0xc2   :  { %934 = vmatpush.bf16.msra.mxu3 %v1528_v37  ;;  %960 = vmatpush.bf16.msrb.mxu1 %v1532_v40  ;;  %v1741_v40 = vld [vmem:[#allocation13 + $0x20] sm:$0xff] }
  0xc3   :  { %921 = vmatpush.bf16.msra.mxu2 %v1464_v56  ;;  %947 = vmatpush.bf16.msrb.mxu0 %v1468_v58 }
  0xc6   :  { %935 = vmatpush.bf16.msra.mxu3 %v1520_v49  ;;  %961 = vmatpush.bf16.msrb.mxu1 %v1524_v52  ;;  %v750_v49 = vld [vmem:[%s2102_s8] sm:$0x3] }
  0xc7   :  { %922 = vmatpush.bf16.msra.mxu2 %v1456_v3  ;;  %v753_v50 = vperm.slane %v750_v49, 1  ;;  %v752_v56 = vperm.slane %v750_v49, 0 }
  0xca   :  { %936 = vmatpush.bf16.msra.mxu3 %v1512_v62  ;;  %962 = vmatpush.bf16.msrb.mxu1 %v1516_v0 }
 0x129   :  { %v443_v6 = vpop.f32.mrf.mxu0 }
 0x12a   :  { %v444_v7 = vadd.f32 %v443_v6, %v245_v5  ;;  %v456_v8 = vpop.f32.mrf.mxu1  ;;  %v1457_v5 = vld [vmem:[#allocation11 + $0x18] sm:$0xf0] }
 0x12b   :  { %v1460_v6 = vor.u32 %v1707_v4, %v1457_v5  ;;  %v1765_v4 = vld [vmem:[%s2104_s10] ss:$0 sm:$0xff]  ;;  %s1983_s10 = smov [#allocation14]  }
 0x12c   :  { %v457_v9 = vadd.f32 %v456_v8, %v444_v7  ;;  %v1447_v7 = vld [vmem:[#allocation11] sm:$0xf]  ;;  %v1706_v8 = vld [vmem:[#allocation11 + $0x4] sm:$0xf0]  ;;  %s1156_s14 = sshll.u32 %s1983_s10, 4  ;;  %s1157_s14 = int_to_ptr.vmem [resolvable:$true] %s1156_s14 }
 0x12d   :  { %948 = vmatpush.bf16.msrb.mxu0 %v1460_v6 }
 0x12e   :  { %v461_v11 = vmax.f32 %v457_v9, 0.0  ;;  %v1705_v9 = vld [vmem:[#allocation11 + $0x4] sm:$0xf] }
 0x12f   :  { %v417_v12 = vpop.f32.mrf.mxu2 }
 0x130   :  { %v463_v13 = vpack.c.bf16 %v461_v11, %v461_v11  ;;  %v418_v14 = vadd.f32 %v417_v12, %v244_v10  ;;  %v430_v15 = vpop.f32.mrf.mxu3  ;;  %v1448_v10 = vor.u32 %v1706_v8, %v1447_v7  ;;  %v1449_v11 = vld [vmem:[#allocation11 + $0x8] sm:$0xf0] }
 0x131   :  { %v445_v16 = vpop.f32.mrf.mxu0  ;;  %v1452_v12 = vor.u32 %v1705_v9, %v1449_v11 }
 0x132   :  { %v431_v17 = vadd.f32 %v430_v15, %v418_v14  ;;  %v458_v18 = vpop.f32.mrf.mxu1  ;;  %683 = vmatmul.bf16.vlgmr.msrb.gmra.mxu3 %v463_v13  ;;  %709 = vmatmul.bf16.vlgmr.msra.gmra.mxu1 %v463_v13  ;;  %v1752_v13 = vld [vmem:[#allocation13 + $0x78] sm:$0xff]  ;;  %v1751_v15 = vld [vmem:[#allocation13 + $0x70] sm:$0xff] }
 0x133   :  { %923 = vmatpush.bf16.msra.mxu2 %v1448_v10  ;;  %949 = vmatpush.bf16.msrb.mxu0 %v1452_v12  ;;  %v1744_v14 = vld [vmem:[#allocation13 + $0x38] sm:$0xff]  ;;  %v1743_v16 = vld [vmem:[#allocation13 + $0x30] sm:$0xff]  ;;  %v1742_v18 = vld [vmem:[#allocation13 + $0x28] sm:$0xff] }
 0x134   :  { %v460_v19 = vmax.f32 %v431_v17, 0.0  ;;  %1117 = vmatpush.bf16.msrb.mxu3 %v1752_v13  ;;  %v1750_v17 = vld [vmem:[#allocation13 + $0x68] sm:$0xff] }
 0x136   :  { %v462_v20 = vpack.c.bf16 %v460_v19, %v460_v19  ;;  %v1749_v19 = vld [vmem:[#allocation13 + $0x60] sm:$0xff] }
 0x137   :  { %v419_v21 = vpop.f32.mrf.mxu2 }
 0x138   :  { %v432_v22 = vpop.f32.mrf.mxu3  ;;  %670 = vmatmul.bf16.vlgmr.msrb.gmra.mxu2 %v462_v20  ;;  %696 = vmatmul.bf16.vlgmr.msra.gmra.mxu0 %v462_v20  ;;  %v496_v21 = vld [vmem:[%s2100_s6] sm:$0x3] }
 0x139   :  { %1104 = vmatpush.bf16.msrb.mxu2 %v1744_v14  ;;  %1118 = vmatpush.bf16.msrb.mxu3 %v1751_v15  ;;  %v499_v22 = vperm.slane %v496_v21, 1  ;;  %v498_v28 = vperm.slane %v496_v21, 0 }
 0x13d   :  { %1105 = vmatpush.bf16.msrb.mxu2 %v1743_v16  ;;  %1119 = vmatpush.bf16.msrb.mxu3 %v1750_v17  ;;  %v1146_v17 = vlaneseq }
 0x141   :  { %1106 = vmatpush.bf16.msrb.mxu2 %v1742_v18  ;;  %1120 = vmatpush.bf16.msrb.mxu3 %v1749_v19 }
 0x145   :  { %1121 = vmatpush.bf16.msrb.mxu3 %v1748_v39  ;;  %1107 = vmatpush.bf16.msrb.mxu2 %v1741_v40 }
 0x149   :  { %1122 = vmatpush.bf16.msrb.mxu3 %v1747_v41  ;;  %1108 = vmatpush.bf16.msrb.mxu2 %v1740_v42 }
 0x14d   :  { %1123 = vmatpush.bf16.msrb.mxu3 %v1746_v43  ;;  %1109 = vmatpush.bf16.msrb.mxu2 %v1739_v44 }
 0x151   :  { %1124 = vmatpush.bf16.msrb.mxu3 %v1745_v45  ;;  %1110 = vmatpush.bf16.msrb.mxu2 %v1738_v46 }
 0x155   :  { %1111 = vmatpush.bf16.msrb.mxu2 %v1737_v47 }
 0x1af   :  { %v710_v20 = vpop.f32.mrf.mxu1 }
 0x1b5   :  { %v684_v23 = vpop.f32.mrf.mxu3  ;;  %v697_v24 = vpop.f32.mrf.mxu0 }
 0x1b6   :  { %v698_v25 = vadd.f32 %v697_v24, %v499_v22  ;;  %v1147_v22 = vand.u32 127, %v1146_v17 }
 0x1b7   :  { %v712_v26 = vpop.f32.mrf.mxu1 }
 0x1b8   :  { %v711_v27 = vadd.f32 %v710_v20, %v698_v25  ;;  %vm1148_vm2 = vcmp.lt.s32.totalorder %v1147_v22, 8 }
 0x1ba   :  { %v715_v29 = vmax.f32 %v711_v27, 0.0 }
 0x1bb   :  { %v671_v30 = vpop.f32.mrf.mxu2 }
 0x1bc   :  { %v717_v31 = vpack.c.bf16 %v715_v29, %v715_v29  ;;  %v672_v32 = vadd.f32 %v671_v30, %v498_v28 }
 0x1bd   :  { %v686_v33 = vpop.f32.mrf.mxu3  ;;  %v699_v34 = vpop.f32.mrf.mxu0 }
 0x1be   :  { %v685_v35 = vadd.f32 %v684_v23, %v672_v32  ;;  %937 = vmatmul.bf16.vlgmr.msra.gmra.mxu3 %v717_v31  ;;  %963 = vmatmul.bf16.vlgmr.msrb.gmra.mxu1 %v717_v31 }
 0x1c0   :  { %v714_v36 = vmax.f32 %v685_v35, 0.0 }
 0x1c2   :  { %v716_v37 = vpack.c.bf16 %v714_v36, %v714_v36 }
 0x1c3   :  { %v673_v38 = vpop.f32.mrf.mxu2 }
 0x1c4   :  { %924 = vmatmul.bf16.vlgmr.msra.gmra.mxu2 %v716_v37  ;;  %950 = vmatmul.bf16.vlgmr.msrb.gmra.mxu0 %v716_v37 }
 0x23b   :  { %v964_v48 = vpop.f32.mrf.mxu1 }
 0x241   :  { %v938_v51 = vpop.f32.mrf.mxu3  ;;  %v951_v52 = vpop.f32.mrf.mxu0 }
 0x242   :  { %v952_v53 = vadd.f32 %v951_v52, %v753_v50 }
 0x243   :  { %v966_v54 = vpop.f32.mrf.mxu1 }
 0x244   :  { %v965_v55 = vadd.f32 %v964_v48, %v952_v53 }
 0x246   :  { %v969_v57 = vmax.f32 %v965_v55, 0.0 }
 0x247   :  { %v925_v58 = vpop.f32.mrf.mxu2 }
 0x248   :  { %v971_v59 = vpack.c.bf16 %v969_v57, %v969_v57  ;;  %v926_v60 = vadd.f32 %v925_v58, %v752_v56 }
 0x249   :  { %v940_v61 = vpop.f32.mrf.mxu3  ;;  %v953_v62 = vpop.f32.mrf.mxu0 }
 0x24a   :  { %v939_v63 = vadd.f32 %v938_v51, %v926_v60  ;;  %1125 = vmatmul.bf16.vlgmr.msrb.gmra.mxu3 %v971_v59 }
 0x24c   :  { %v968_v0 = vmax.f32 %v939_v63, 0.0 }
 0x24e   :  { %v970_v1 = vpack.c.bf16 %v968_v0, %v968_v0 }
 0x24f   :  { %v927_v2 = vpop.f32.mrf.mxu2 }
 0x250   :  { %1112 = vmatmul.bf16.vlgmr.msrb.gmra.mxu2 %v970_v1 }
 0x2cd   :  { %v1126_v3 = vpop.f32.mrf.mxu3 }
 0x2d3   :  { %v1113_v5 = vpop.f32.mrf.mxu2 }
 0x2d4   :  { %v1114_v6 = vadd.f32 %v1765_v4, %v1113_v5 }
 0x2d5   :  { %v1128_v7 = vpop.f32.mrf.mxu3 }
 0x2d6   :  { %v1127_v8 = vadd.f32 %v1126_v3, %v1114_v6 }
 0x2d8   :  { %v1131_v9 = vand.u32 2147483647, %v1127_v8  ;;  %v1130_v23 = vmax.f32 %v1127_v8, 0.0 }
 0x2da   :  { %v1132_v10 = vsub.f32 0.0, %v1131_v9 }
 0x2db   :  { %v1115_v11 = vpop.f32.mrf.mxu2 }
 0x2dc   :  { %v1133_v12 = vmul.f32 1.442695, %v1132_v10 }
 0x2de   :  { %1766 = vpow2.f32 %v1133_v12 }
 0x2e4   :  { %v1767_v13 = vpop.eup %1766 }
 0x2e5   :  { %v1135_v14 = vadd.f32 1.0, %v1767_v13  ;;  %v1138_v15 = vmul.f32 -0.5, %v1767_v13  ;;  %v1141_v18 = vand.u32 2147483647, %v1767_v13 }
 0x2e7   :  { %1768 = vlog2.f32 %v1135_v14  ;;  %v1139_v16 = vadd.f32 1.0, %v1138_v15  ;;  %vm1142_vm1 = vcmp.lt.f32.partialorder %v1141_v18, 0.0004427343 }
 0x2e9   :  { %v1140_v21 = vmul.f32 %v1767_v13, %v1139_v16 }
 0x2ed   :  { %v1769_v19 = vpop.eup %1768 }
 0x2ee   :  { %v1137_v20 = vmul.f32 0.6931472, %v1769_v19 }
 0x2f0   :  { %v1143_v24 = vsel %vm1142_vm1, %v1140_v21, %v1137_v20 }
 0x2f1   :  { %v1144_v25 = vadd.f32 %v1143_v24, %v1130_v23 }
 0x2f3   :  { %v1145_v26 = vadd.f32 1e-07, %v1144_v25 }
 0x2f5   :  { %v1149_v27 = vsel %vm1148_vm2, %v1127_v8, %v1145_v26 }
 0x2f6   :  { %1150 = vst [vmem:[#allocation14] sm:$0xff] %v1149_v27 }
 0x2f7   :  { %1161 = dma.vmem_to_hbm [thread:$0]  %s1157_s14, 128, %s1159_s7, [#allocation4]  }
 0x2f8   :  { %1970 = dma.done.wait [#allocation4], 128  }
 0x2f9   :  { %1971 = vsyncadd [#allocation4], 4294967168 }
 0x2fa   :  { %1166 = vsyncpa [#allocation3], 1 }
 0x2fb   :  { %1167 = vsyncpa [#allocation6], 1 }
 0x2fc   :  { %1168 = vsyncpa [#allocation9], 1 }
 0x2fd   :  { %1169 = vsyncpa [#allocation12], 1 }
 0x2fe   :  { %1170 = vsyncpa [#allocation4], 1 }

// kernel: tpu_custom_call.1
= control target key start
LH: loop header
LB: loop body
LE: loop exit
PB: predicated region body
PF: predicated region fallthrough
CT: control target
= control target key end

     0   :  { %16 = vsyncpa [#allocation3], 0  ;;  %s2094_s0 = inlined_call_operand.hbm [shape: bf16[8,32], index: 0, kind: input, shape index: {}]   ;;  %s2095_s1 = inlined_call_operand.hbm [shape: bf16[32,256], index: 1, kind: input, shape index: {}]   ;;  %s2096_s2 = inlined_call_operand.hbm [shape: f32[1,256], index: 2, kind: input, shape index: {}]   ;;  %s2097_s3 = inlined_call_operand.hbm [shape: bf16[256,256], index: 3, kind: input, shape index: {}]   ;;  %s2098_s4 = inlined_call_operand.vmem [shape: f32[1,256], index: 4, kind: input, shape index: {}]   ;;  %s2099_s5 = inlined_call_operand.hbm [shape: bf16[256,256], index: 5, kind: input, shape index: {}]   ;;  %s2100_s6 = inlined_call_operand.vmem [shape: f32[1,256], index: 6, kind: input, shape index: {}]   ;;  %s2101_s7 = inlined_call_operand.hbm [shape: bf16[256,256], index: 7, kind: input, shape index: {}]   ;;  %s2102_s8 = inlined_call_operand.vmem [shape: f32[1,256], index: 8, kind: input, shape index: {}]   ;;  %s2103_s9 = inlined_call_operand.hbm [shape: bf16[256,128], index: 9, kind: input, shape index: {}]   ;;  %s2104_s10 = inlined_call_operand.vmem [shape: f32[1,128], index: 10, kind: input, shape index: {}]   ;;  %s2105_s11 = inlined_call_operand.hbm [shape: f32[8,128], index: 11, kind: output, shape index: {}]  }
   0x1   :  { %17 = vsyncpa [#allocation6], 0 }
   0x2   :  { %18 = vsyncpa [#allocation9], 0 }
   0x3   :  { %19 = vsyncpa [#allocation12], 0  ;;  %s36_s19 = sshll.u32 %s2095_s1, 4  ;;  %s37_s19 = int_to_ptr.hbm [resolvable:$true] %s36_s19 }
   0x4   :  { %20 = vsyncpa [#allocation4], 0  ;;  %s1972_s20 = smov [#allocation5]   ;;  %s60_s24 = sshll.u32 %s2097_s3, 4  ;;  %s61_s24 = int_to_ptr.hbm [resolvable:$true] %s60_s24 }
   0x5   :  { %s38_s21 = sshll.u32 %s1972_s20, 4  ;;  %s1973_s25 = smov 128   ;;  %s39_s21 = int_to_ptr.vmem [resolvable:$true] %s38_s21 }
   0x6   :  { %s1974_s26 = smov 8   ;;  %s1975_s27 = smov [#allocation8]  }
   0x7   :  { %44 = dma.hbm_to_vmem [thread:$0]  %s37_s19, 512, %s39_s21, [#allocation6], %s1973_s25, %s1973_s25, %s1974_s26  }
   0x8   :  { %s62_s28 = sshll.u32 %s1975_s27, 4  ;;  %s90_s30 = sshll.u32 %s2101_s7, 4  ;;  %s63_s28 = int_to_ptr.vmem [resolvable:$true] %s62_s28  ;;  %s91_s30 = int_to_ptr.hbm [resolvable:$true] %s90_s30 }
   0x9   :  { %68 = dma.hbm_to_vmem [thread:$0]  %s61_s24, 4096, %s63_s28, [#allocation9], %s1973_s25, %s1973_s25, %s1974_s26  }
   0xa   :  { %s26_s13 = sshll.u32 %s2094_s0, 4  ;;  %s1976_s14 = smov [#allocation11]   ;;  %s27_s13 = int_to_ptr.hbm [resolvable:$true] %s26_s13 }
   0xb   :  { %s92_s15 = sshll.u32 %s1976_s14, 4  ;;  %s1977_s16 = smov [#allocation2]   ;;  %s93_s15 = int_to_ptr.vmem [resolvable:$true] %s92_s15 }
   0xc   :  { %98 = dma.hbm_to_vmem [thread:$0]  %s91_s30, 4096, %s93_s15, [#allocation12], %s1973_s25, %s1973_s25, %s1974_s26  }
   0xd   :  { %s28_s7 = sshll.u32 %s1977_s16, 4  ;;  %s50_s19 = sshll.u32 %s2096_s2, 4  ;;  %s29_s7 = int_to_ptr.vmem [resolvable:$true] %s28_s7  ;;  %s51_s19 = int_to_ptr.hbm [resolvable:$true] %s50_s19 }
   0xe   :  { %31 = dma.hbm_to_vmem [thread:$0]  %s27_s13, 64, %s29_s7, [#allocation3]  }
   0xf   :  { %s75_s0 = sshll.u32 %s2099_s5, 4  ;;  %s1978_s22 = smov [#allocation7]   ;;  %s76_s0 = int_to_ptr.hbm [resolvable:$true] %s75_s0 }
  0x10   :  { %s52_s23 = sshll.u32 %s1978_s22, 4  ;;  %s1979_s24 = smov [#allocation10]   ;;  %s53_s23 = int_to_ptr.vmem [resolvable:$true] %s52_s23 }
  0x11   :  { %55 = dma.hbm_to_vmem [thread:$0]  %s51_s19, 32, %s53_s23, [#allocation6]  }
  0x12   :  { %s77_s27 = sshll.u32 %s1979_s24, 4  ;;  %s105_s1 = sshll.u32 %s2103_s9, 4  ;;  %s78_s27 = int_to_ptr.vmem [resolvable:$true] %s77_s27  ;;  %s106_s1 = int_to_ptr.hbm [resolvable:$true] %s105_s1 }
  0x13   :  { %83 = dma.hbm_to_vmem [thread:$0]  %s76_s0, 4096, %s78_s27, [#allocation9], %s1973_s25, %s1973_s25, %s1974_s26  }
  0x14   :  { %s1980_s2 = smov [#allocation13]   ;;  %s1981_s5 = smov 64  }
  0x15   :  { %s107_s30 = sshll.u32 %s1980_s2, 4  ;;  %s1982_s3 = smov 4   ;;  %s108_s30 = int_to_ptr.vmem [resolvable:$true] %s107_s30 }
  0x16   :  { %113 = dma.hbm_to_vmem [thread:$0]  %s106_s1, 2048, %s108_s30, [#allocation12], %s1981_s5, %s1981_s5, %s1982_s3  }
  0x17   :  { %1962 = dma.done.wait [#allocation3], 64  }
  0x18   :  { %1963 = vsyncadd [#allocation3], 4294967232 }
  0x19   :  { %1964 = dma.done.wait [#allocation6], 544  }
  0x1a   :  { %1965 = vsyncadd [#allocation6], 4294966752 }
  0x1b   :  { %1966 = dma.done.wait [#allocation9], 8192  }
  0x1c   :  { %1967 = vsyncadd [#allocation9], 4294959104 }
  0x1d   :  { %1968 = dma.done.wait [#allocation12], 6144  }
  0x1e   :  { %1969 = vsyncadd [#allocation12], 4294961152  ;;  %v1181_v0 = vld [vmem:[#allocation5 + $0x10] sm:$0xf]  ;;  %v1640_v1 = vld [vmem:[#allocation5 + $0x14] sm:$0xf0] }
  0x1f   :  { %v1639_v2 = vld [vmem:[#allocation5 + $0x14] sm:$0xf]  ;;  %v1182_v3 = vor.u32 %v1640_v1, %v1181_v0  ;;  %v1183_v4 = vld [vmem:[#allocation5 + $0x18] sm:$0xf0]  ;;  %v1173_v5 = vld [vmem:[#allocation5] sm:$0xf] }
  0x20   :  { %v1638_v6 = vld [vmem:[#allocation5 + $0x4] sm:$0xf0]  ;;  %v1186_v7 = vor.u32 %v1639_v2, %v1183_v4  ;;  %v1637_v8 = vld [vmem:[#allocation5 + $0x4] sm:$0xf]  ;;  %v1175_v9 = vld [vmem:[#allocation5 + $0x8] sm:$0xf0] }
  0x21   :  { %vm176_vm0 = vcmask 261120   ;;  %186 = vmatpush.bf16.msra.mxu0 %v1182_v3  ;;  %v1174_v10 = vor.u32 %v1638_v6, %v1173_v5  ;;  %v1247_v11 = vld [vmem:[#allocation8 + $0x70] sm:$0xf]  ;;  %v1656_v12 = vld [vmem:[#allocation8 + $0x74] sm:$0xf0]  ;;  %v1178_v14 = vor.u32 %v1637_v8, %v1175_v9  ;;  %s1158_s7 = sshll.u32 %s2105_s11, 4  ;;  %s1159_s7 = int_to_ptr.hbm [resolvable:$true] %s1158_s7 }
  0x22   :  { %v1311_v13 = vld [vmem:[#allocation8 + $0xf0] sm:$0xf]  ;;  %199 = vmatpush.bf16.msra.mxu1 %v1186_v7  ;;  %v1248_v15 = vor.u32 %v1656_v12, %v1247_v11  ;;  %v1672_v16 = vld [vmem:[#allocation8 + $0xf4] sm:$0xf0]  ;;  %v1655_v17 = vld [vmem:[#allocation8 + $0x74] sm:$0xf] }
  0x23   :  { %v1249_v18 = vld [vmem:[#allocation8 + $0x78] sm:$0xf0]  ;;  %v1312_v20 = vor.u32 %v1672_v16, %v1311_v13  ;;  %v1671_v22 = vld [vmem:[#allocation8 + $0xf4] sm:$0xf]  ;;  %v1239_v24 = vld [vmem:[#allocation8 + $0x60] sm:$0xf] }
  0x24   :  { %v145_v19 = vld [vmem:[#allocation2] sm:$0xf]  ;;  %v1252_v21 = vor.u32 %v1655_v17, %v1249_v18  ;;  %408 = vmatpush.bf16.msra.mxu2 %v1248_v15  ;;  %v1654_v26 = vld [vmem:[#allocation8 + $0x64] sm:$0xf0]  ;;  %v1303_v27 = vld [vmem:[#allocation8 + $0xe0] sm:$0xf] }
  0x25   :  { %v1313_v23 = vld [vmem:[#allocation8 + $0xf8] sm:$0xf0]  ;;  %v1670_v28 = vld [vmem:[#allocation8 + $0xe4] sm:$0xf0]  ;;  %187 = vmatpush.bf16.msra.mxu0 %v1174_v10  ;;  %421 = vmatpush.bf16.msra.mxu3 %v1312_v20  ;;  %v1240_v29 = vor.u32 %v1654_v26, %v1239_v24  ;;  %v1653_v31 = vld [vmem:[#allocation8 + $0x64] sm:$0xf] }
  0x26   :  { %v1316_v25 = vor.u32 %v1671_v22, %v1313_v23  ;;  %v1304_v30 = vor.u32 %v1670_v28, %v1303_v27  ;;  %v1241_v32 = vld [vmem:[#allocation8 + $0x68] sm:$0xf0]  ;;  %v1669_v33 = vld [vmem:[#allocation8 + $0xe4] sm:$0xf]  ;;  %200 = vmatpush.bf16.msra.mxu1 %v1178_v14  ;;  %v1231_v36 = vld [vmem:[#allocation8 + $0x50] sm:$0xf] }
  0x27   :  { %v1244_v34 = vor.u32 %v1653_v31, %v1241_v32  ;;  %v1305_v35 = vld [vmem:[#allocation8 + $0xe8] sm:$0xf0]  ;;  %v1652_v37 = vld [vmem:[#allocation8 + $0x54] sm:$0xf0]  ;;  %v1295_v39 = vld [vmem:[#allocation8 + $0xd0] sm:$0xf] }
  0x28   :  { %v1308_v38 = vor.u32 %v1669_v33, %v1305_v35  ;;  %v1668_v40 = vld [vmem:[#allocation8 + $0xd4] sm:$0xf0]  ;;  %v1651_v41 = vld [vmem:[#allocation8 + $0x54] sm:$0xf]  ;;  %1187 = vmatmul.msk.bf16.vlgmr.msra.gmra.mxu0 %vm176_vm0, %v145_v19  ;;  %409 = vmatpush.bf16.msra.mxu2 %v1240_v29  ;;  %v1232_v42 = vor.u32 %v1652_v37, %v1231_v36  ;;  %v1233_v43 = vld [vmem:[#allocation8 + $0x58] sm:$0xf0] }
  0x29   :  { %434 = vmatpush.bf16.msrb.mxu0 %v1252_v21  ;;  %v1667_v44 = vld [vmem:[#allocation8 + $0xd4] sm:$0xf]  ;;  %v1297_v45 = vld [vmem:[#allocation8 + $0xd8] sm:$0xf0]  ;;  %1188 = vmatmul.msk.bf16.vlgmr.msra.gmra.mxu1 %vm176_vm0, %v145_v19  ;;  %v1296_v46 = vor.u32 %v1668_v40, %v1295_v39  ;;  %v1223_v47 = vld [vmem:[#allocation8 + $0x40] sm:$0xf]  ;;  %v1236_v49 = vor.u32 %v1651_v41, %v1233_v43 }
  0x2a   :  { %447 = vmatpush.bf16.msrb.mxu1 %v1316_v25  ;;  %422 = vmatpush.bf16.msra.mxu3 %v1304_v30  ;;  %v1650_v48 = vld [vmem:[#allocation8 + $0x44] sm:$0xf0]  ;;  %v1287_v50 = vld [vmem:[#allocation8 + $0xc0] sm:$0xf]  ;;  %v1300_v52 = vor.u32 %v1667_v44, %v1297_v45  ;;  %v1649_v53 = vld [vmem:[#allocation8 + $0x44] sm:$0xf] }
  0x2b   :  { %v1666_v51 = vld [vmem:[#allocation8 + $0xc4] sm:$0xf0]  ;;  %v1225_v54 = vld [vmem:[#allocation8 + $0x48] sm:$0xf0]  ;;  %v1224_v55 = vor.u32 %v1650_v48, %v1223_v47  ;;  %v1665_v56 = vld [vmem:[#allocation8 + $0xc4] sm:$0xf] }
  0x2c   :  { %410 = vmatpush.bf16.msra.mxu2 %v1232_v42  ;;  %v1289_v57 = vld [vmem:[#allocation8 + $0xc8] sm:$0xf0]  ;;  %v1288_v58 = vor.u32 %v1666_v51, %v1287_v50  ;;  %v1215_v59 = vld [vmem:[#allocation8 + $0x30] sm:$0xf]  ;;  %v1648_v60 = vld [vmem:[#allocation8 + $0x34] sm:$0xf0]  ;;  %v1228_v61 = vor.u32 %v1649_v53, %v1225_v54 }
  0x2d   :  { %435 = vmatpush.bf16.msrb.mxu0 %v1244_v34  ;;  %v1279_v62 = vld [vmem:[#allocation8 + $0xb0] sm:$0xf]  ;;  %v1664_v63 = vld [vmem:[#allocation8 + $0xb4] sm:$0xf0]  ;;  %v1292_v0 = vor.u32 %v1665_v56, %v1289_v57  ;;  %v1647_v1 = vld [vmem:[#allocation8 + $0x34] sm:$0xf]  ;;  %v1216_v3 = vor.u32 %v1648_v60, %v1215_v59 }
  0x2e   :  { %448 = vmatpush.bf16.msrb.mxu1 %v1308_v38  ;;  %423 = vmatpush.bf16.msra.mxu3 %v1296_v46  ;;  %v1217_v2 = vld [vmem:[#allocation8 + $0x38] sm:$0xf0]  ;;  %v1663_v4 = vld [vmem:[#allocation8 + $0xb4] sm:$0xf]  ;;  %v1280_v6 = vor.u32 %v1664_v63, %v1279_v62  ;;  %v1207_v7 = vld [vmem:[#allocation8 + $0x20] sm:$0xf] }
  0x2f   :  { %v1281_v5 = vld [vmem:[#allocation8 + $0xb8] sm:$0xf0]  ;;  %v1646_v8 = vld [vmem:[#allocation8 + $0x24] sm:$0xf0]  ;;  %v1220_v9 = vor.u32 %v1647_v1, %v1217_v2  ;;  %v1271_v10 = vld [vmem:[#allocation8 + $0xa0] sm:$0xf] }
  0x30   :  { %411 = vmatpush.bf16.msra.mxu2 %v1224_v55  ;;  %v1662_v11 = vld [vmem:[#allocation8 + $0xa4] sm:$0xf0]  ;;  %v1284_v12 = vor.u32 %v1663_v4, %v1281_v5  ;;  %v1645_v13 = vld [vmem:[#allocation8 + $0x24] sm:$0xf]  ;;  %v1209_v14 = vld [vmem:[#allocation8 + $0x28] sm:$0xf0]  ;;  %v1208_v15 = vor.u32 %v1646_v8, %v1207_v7 }
  0x31   :  { %436 = vmatpush.bf16.msrb.mxu0 %v1236_v49  ;;  %v1661_v16 = vld [vmem:[#allocation8 + $0xa4] sm:$0xf]  ;;  %v1273_v17 = vld [vmem:[#allocation8 + $0xa8] sm:$0xf0]  ;;  %v1272_v18 = vor.u32 %v1662_v11, %v1271_v10  ;;  %v1212_v19 = vor.u32 %v1645_v13, %v1209_v14  ;;  %v1199_v21 = vld [vmem:[#allocation8 + $0x10] sm:$0xf] }
  0x32   :  { %449 = vmatpush.bf16.msrb.mxu1 %v1300_v52  ;;  %424 = vmatpush.bf16.msra.mxu3 %v1288_v58  ;;  %v1276_v20 = vor.u32 %v1661_v16, %v1273_v17  ;;  %v1644_v22 = vld [vmem:[#allocation8 + $0x14] sm:$0xf0]  ;;  %v1263_v23 = vld [vmem:[#allocation8 + $0x90] sm:$0xf]  ;;  %v1643_v26 = vld [vmem:[#allocation8 + $0x14] sm:$0xf] }
  0x33   :  { %v1200_v24 = vor.u32 %v1644_v22, %v1199_v21  ;;  %v1660_v25 = vld [vmem:[#allocation8 + $0x94] sm:$0xf0]  ;;  %v1201_v27 = vld [vmem:[#allocation8 + $0x18] sm:$0xf0]  ;;  %v1659_v30 = vld [vmem:[#allocation8 + $0x94] sm:$0xf] }
  0x34   :  { %412 = vmatpush.bf16.msra.mxu2 %v1216_v3  ;;  %v1264_v28 = vor.u32 %v1660_v25, %v1263_v23  ;;  %v1204_v29 = vor.u32 %v1643_v26, %v1201_v27  ;;  %v1265_v31 = vld [vmem:[#allocation8 + $0x98] sm:$0xf0]  ;;  %v1191_v33 = vld [vmem:[#allocation8] sm:$0xf]  ;;  %v1642_v34 = vld [vmem:[#allocation8 + $0x4] sm:$0xf0] }
  0x35   :  { %437 = vmatpush.bf16.msrb.mxu0 %v1228_v61  ;;  %v1268_v32 = vor.u32 %v1659_v30, %v1265_v31  ;;  %v1255_v35 = vld [vmem:[#allocation8 + $0x80] sm:$0xf]  ;;  %v1192_v36 = vor.u32 %v1642_v34, %v1191_v33  ;;  %v1658_v37 = vld [vmem:[#allocation8 + $0x84] sm:$0xf0]  ;;  %v1641_v38 = vld [vmem:[#allocation8 + $0x4] sm:$0xf] }
  0x36   :  { %450 = vmatpush.bf16.msrb.mxu1 %v1292_v0  ;;  %425 = vmatpush.bf16.msra.mxu3 %v1280_v6  ;;  %v1193_v39 = vld [vmem:[#allocation8 + $0x8] sm:$0xf0]  ;;  %v1256_v40 = vor.u32 %v1658_v37, %v1255_v35  ;;  %v1657_v42 = vld [vmem:[#allocation8 + $0x84] sm:$0xf]  ;;  %v1439_v45 = vld [vmem:[#allocation10 + $0xf0] sm:$0xf] }
  0x37   :  { %v1196_v41 = vor.u32 %v1641_v38, %v1193_v39  ;;  %v1257_v43 = vld [vmem:[#allocation8 + $0x88] sm:$0xf0]  ;;  %v1704_v46 = vld [vmem:[#allocation10 + $0xf4] sm:$0xf0]  ;;  %v1703_v47 = vld [vmem:[#allocation10 + $0xf4] sm:$0xf] }
  0x38   :  { %413 = vmatpush.bf16.msra.mxu2 %v1208_v15  ;;  %v1260_v44 = vor.u32 %v1657_v42, %v1257_v43  ;;  %v1440_v48 = vor.u32 %v1704_v46, %v1439_v45  ;;  %v1441_v49 = vld [vmem:[#allocation10 + $0xf8] sm:$0xf0]  ;;  %v1431_v50 = vld [vmem:[#allocation10 + $0xe0] sm:$0xf]  ;;  %v1702_v51 = vld [vmem:[#allocation10 + $0xe4] sm:$0xf0] }
  0x39   :  { %438 = vmatpush.bf16.msrb.mxu0 %v1220_v9  ;;  %v1444_v52 = vor.u32 %v1703_v47, %v1441_v49  ;;  %v1701_v53 = vld [vmem:[#allocation10 + $0xe4] sm:$0xf]  ;;  %v1433_v54 = vld [vmem:[#allocation10 + $0xe8] sm:$0xf0]  ;;  %v1375_v55 = vld [vmem:[#allocation10 + $0x70] sm:$0xf]  ;;  %v1432_v56 = vor.u32 %v1702_v51, %v1431_v50 }
  0x3a   :  { %451 = vmatpush.bf16.msrb.mxu1 %v1284_v12  ;;  %426 = vmatpush.bf16.msra.mxu3 %v1272_v18  ;;  %v1688_v57 = vld [vmem:[#allocation10 + $0x74] sm:$0xf0]  ;;  %v1687_v58 = vld [vmem:[#allocation10 + $0x74] sm:$0xf]  ;;  %v1377_v59 = vld [vmem:[#allocation10 + $0x78] sm:$0xf0]  ;;  %v1436_v60 = vor.u32 %v1701_v53, %v1433_v54 }
  0x3b   :  { %v1376_v61 = vor.u32 %v1688_v57, %v1375_v55  ;;  %v1380_v62 = vor.u32 %v1687_v58, %v1377_v59  ;;  %v1423_v63 = vld [vmem:[#allocation10 + $0xd0] sm:$0xf]  ;;  %v1700_v0 = vld [vmem:[#allocation10 + $0xd4] sm:$0xf0]  ;;  %v1699_v1 = vld [vmem:[#allocation10 + $0xd4] sm:$0xf] }
  0x3c   :  { %414 = vmatpush.bf16.msra.mxu2 %v1200_v24  ;;  %v1425_v2 = vld [vmem:[#allocation10 + $0xd8] sm:$0xf0]  ;;  %v1367_v3 = vld [vmem:[#allocation10 + $0x60] sm:$0xf]  ;;  %v1686_v4 = vld [vmem:[#allocation10 + $0x64] sm:$0xf0]  ;;  %v1424_v8 = vor.u32 %v1700_v0, %v1423_v63 }
  0x3d   :  { %439 = vmatpush.bf16.msrb.mxu0 %v1212_v19  ;;  %v1368_v5 = vor.u32 %v1686_v4, %v1367_v3  ;;  %v1685_v6 = vld [vmem:[#allocation10 + $0x64] sm:$0xf]  ;;  %v1369_v7 = vld [vmem:[#allocation10 + $0x68] sm:$0xf0]  ;;  %v1415_v10 = vld [vmem:[#allocation10 + $0xc0] sm:$0xf]  ;;  %v1428_v12 = vor.u32 %v1699_v1, %v1425_v2 }
  0x3e   :  { %452 = vmatpush.bf16.msrb.mxu1 %v1276_v20  ;;  %427 = vmatpush.bf16.msra.mxu3 %v1264_v28  ;;  %v1372_v9 = vor.u32 %v1685_v6, %v1369_v7  ;;  %v1698_v11 = vld [vmem:[#allocation10 + $0xc4] sm:$0xf0]  ;;  %v1359_v13 = vld [vmem:[#allocation10 + $0x50] sm:$0xf]  ;;  %v1684_v14 = vld [vmem:[#allocation10 + $0x54] sm:$0xf0] }
  0x3f   :  { %v1683_v15 = vld [vmem:[#allocation10 + $0x54] sm:$0xf]  ;;  %v1697_v16 = vld [vmem:[#allocation10 + $0xc4] sm:$0xf]  ;;  %v1417_v17 = vld [vmem:[#allocation10 + $0xc8] sm:$0xf0]  ;;  %v1360_v19 = vor.u32 %v1684_v14, %v1359_v13  ;;  %v1416_v22 = vor.u32 %v1698_v11, %v1415_v10 }
  0x40   :  { %415 = vmatpush.bf16.msra.mxu2 %v1192_v36  ;;  %v1361_v18 = vld [vmem:[#allocation10 + $0x58] sm:$0xf0]  ;;  %v1351_v21 = vld [vmem:[#allocation10 + $0x40] sm:$0xf]  ;;  %v1682_v23 = vld [vmem:[#allocation10 + $0x44] sm:$0xf0]  ;;  %v1420_v26 = vor.u32 %v1697_v16, %v1417_v17 }
  0x41   :  { %440 = vmatpush.bf16.msrb.mxu0 %v1204_v29  ;;  %v1364_v20 = vor.u32 %v1683_v15, %v1361_v18  ;;  %v1681_v24 = vld [vmem:[#allocation10 + $0x44] sm:$0xf]  ;;  %v1353_v25 = vld [vmem:[#allocation10 + $0x48] sm:$0xf0]  ;;  %v1407_v27 = vld [vmem:[#allocation10 + $0xb0] sm:$0xf]  ;;  %v1352_v31 = vor.u32 %v1682_v23, %v1351_v21 }
  0x42   :  { %453 = vmatpush.bf16.msrb.mxu1 %v1268_v32  ;;  %428 = vmatpush.bf16.msra.mxu3 %v1256_v40  ;;  %v1696_v28 = vld [vmem:[#allocation10 + $0xb4] sm:$0xf0]  ;;  %v1695_v29 = vld [vmem:[#allocation10 + $0xb4] sm:$0xf]  ;;  %v1409_v30 = vld [vmem:[#allocation10 + $0xb8] sm:$0xf0]  ;;  %v1356_v32 = vor.u32 %v1681_v24, %v1353_v25 }
  0x43   :  { %v1408_v33 = vor.u32 %v1696_v28, %v1407_v27  ;;  %v1412_v34 = vor.u32 %v1695_v29, %v1409_v30  ;;  %v1399_v35 = vld [vmem:[#allocation10 + $0xa0] sm:$0xf]  ;;  %v1694_v36 = vld [vmem:[#allocation10 + $0xa4] sm:$0xf0]  ;;  %v150_v37 = vld [vmem:[#allocation7] sm:$0x3] }
  0x44   :  { %662 = vmatpush.bf16.msrb.mxu2 %v1376_v61  ;;  %v1693_v38 = vld [vmem:[#allocation10 + $0xa4] sm:$0xf]  ;;  %v1401_v39 = vld [vmem:[#allocation10 + $0xa8] sm:$0xf0]  ;;  %v1400_v40 = vor.u32 %v1694_v36, %v1399_v35  ;;  %v153_v43 = vperm.slane %v150_v37, 1 }
  0x45   :  { %441 = vmatpush.bf16.msrb.mxu0 %v1196_v41  ;;  %v152_v41 = vperm.slane %v150_v37, 0  ;;  %v1404_v42 = vor.u32 %v1693_v38, %v1401_v39  ;;  %v1343_v54 = vld [vmem:[#allocation10 + $0x30] sm:$0xf]  ;;  %v1680_v55 = vld [vmem:[#allocation10 + $0x34] sm:$0xf0] }
  0x46   :  { %454 = vmatpush.bf16.msrb.mxu1 %v1260_v44  ;;  %675 = vmatpush.bf16.msrb.mxu3 %v1440_v48  ;;  %v1344_v57 = vor.u32 %v1680_v55, %v1343_v54  ;;  %v1345_v58 = vld [vmem:[#allocation10 + $0x38] sm:$0xf0]  ;;  %v1692_v61 = vld [vmem:[#allocation10 + $0x94] sm:$0xf0]  ;;  %v1335_v2 = vld [vmem:[#allocation10 + $0x20] sm:$0xf] }
  0x47   :  { %v1393_v0 = vld [vmem:[#allocation10 + $0x98] sm:$0xf0]  ;;  %v1678_v3 = vld [vmem:[#allocation10 + $0x24] sm:$0xf0]  ;;  %v1677_v4 = vld [vmem:[#allocation10 + $0x24] sm:$0xf] }
  0x48   :  { %663 = vmatpush.bf16.msrb.mxu2 %v1368_v5  ;;  %v1336_v5 = vor.u32 %v1678_v3, %v1335_v2  ;;  %v1337_v6 = vld [vmem:[#allocation10 + $0x28] sm:$0xf0]  ;;  %v1689_v10 = vld [vmem:[#allocation10 + $0x84] sm:$0xf]  ;;  %v1327_v14 = vld [vmem:[#allocation10 + $0x10] sm:$0xf] }
  0x49   :  { %688 = vmatpush.bf16.msra.mxu0 %v1380_v62  ;;  %v1691_v62 = vld [vmem:[#allocation10 + $0x94] sm:$0xf]  ;;  %v1340_v7 = vor.u32 %v1677_v4, %v1337_v6  ;;  %v1676_v15 = vld [vmem:[#allocation10 + $0x14] sm:$0xf0]  ;;  %v1329_v18 = vld [vmem:[#allocation10 + $0x18] sm:$0xf0] }
  0x4a   :  { %701 = vmatpush.bf16.msra.mxu1 %v1444_v52  ;;  %676 = vmatpush.bf16.msrb.mxu3 %v1432_v56  ;;  %v1679_v56 = vld [vmem:[#allocation10 + $0x34] sm:$0xf]  ;;  %v1396_v1 = vor.u32 %v1691_v62, %v1393_v0  ;;  %v1328_v16 = vor.u32 %v1676_v15, %v1327_v14  ;;  %v1674_v21 = vld [vmem:[#allocation10 + $0x4] sm:$0xf0]  ;;  %v1321_v24 = vld [vmem:[#allocation10 + $0x8] sm:$0xf0] }
  0x4b   :  { %v1348_v59 = vor.u32 %v1679_v56, %v1345_v58  ;;  %v1675_v17 = vld [vmem:[#allocation10 + $0x14] sm:$0xf]  ;;  %v1736_v27 = vld [vmem:[#allocation11 + $0xf4] sm:$0xf0]  ;;  %v1569_v30 = vld [vmem:[#allocation11 + $0xf8] sm:$0xf0] }
  0x4c   :  { %664 = vmatpush.bf16.msrb.mxu2 %v1360_v19  ;;  %v1332_v19 = vor.u32 %v1675_v17, %v1329_v18  ;;  %v1735_v28 = vld [vmem:[#allocation11 + $0xf4] sm:$0xf]  ;;  %v1561_v35 = vld [vmem:[#allocation11 + $0xe8] sm:$0xf0]  ;;  %v1503_v36 = vld [vmem:[#allocation11 + $0x70] sm:$0xf] }
  0x4d   :  { %689 = vmatpush.bf16.msra.mxu0 %v1372_v9  ;;  %v1690_v9 = vld [vmem:[#allocation10 + $0x84] sm:$0xf0]  ;;  %v1720_v38 = vld [vmem:[#allocation11 + $0x74] sm:$0xf0]  ;;  %v1719_v39 = vld [vmem:[#allocation11 + $0x74] sm:$0xf] }
  0x4e   :  { %702 = vmatpush.bf16.msra.mxu1 %v1436_v60  ;;  %677 = vmatpush.bf16.msrb.mxu3 %v1424_v8  ;;  %v1391_v60 = vld [vmem:[#allocation10 + $0x90] sm:$0xf]  ;;  %v1383_v8 = vld [vmem:[#allocation10 + $0x80] sm:$0xf]  ;;  %v1730_v56 = vld [vmem:[#allocation11 + $0xc4] sm:$0xf0] }
  0x4f   :  { %v1392_v63 = vor.u32 %v1692_v61, %v1391_v60  ;;  %v1384_v11 = vor.u32 %v1690_v9, %v1383_v8  ;;  %v1543_v55 = vld [vmem:[#allocation11 + $0xc0] sm:$0xf]  ;;  %v1487_v58 = vld [vmem:[#allocation11 + $0x50] sm:$0xf]  ;;  %v1715_v60 = vld [vmem:[#allocation11 + $0x54] sm:$0xf] }
  0x50   :  { %665 = vmatpush.bf16.msrb.mxu2 %v1352_v31  ;;  %v1559_v31 = vld [vmem:[#allocation11 + $0xe0] sm:$0xf]  ;;  %v1729_v61 = vld [vmem:[#allocation11 + $0xc4] sm:$0xf]  ;;  %v1545_v62 = vld [vmem:[#allocation11 + $0xc8] sm:$0xf0]  ;;  %v1544_v3 = vor.u32 %v1730_v56, %v1543_v55 }
  0x51   :  { %690 = vmatpush.bf16.msra.mxu0 %v1364_v20  ;;  %v1319_v20 = vld [vmem:[#allocation10] sm:$0xf]  ;;  %v242_v2 = vld [vmem:[%s2098_s4] sm:$0x3]  ;;  %v1548_v4 = vor.u32 %v1729_v61, %v1545_v62  ;;  %v1709_v55 = vld [vmem:[#allocation11 + $0x24] sm:$0xf] }
  0x52   :  { %703 = vmatpush.bf16.msra.mxu1 %v1428_v12  ;;  %678 = vmatpush.bf16.msrb.mxu3 %v1416_v22  ;;  %v1385_v12 = vld [vmem:[#allocation10 + $0x88] sm:$0xf0]  ;;  %v1673_v22 = vld [vmem:[#allocation10 + $0x4] sm:$0xf]  ;;  %v1320_v23 = vor.u32 %v1674_v21, %v1319_v20 }
  0x53   :  { %v1388_v13 = vor.u32 %v1689_v10, %v1385_v12  ;;  %v1324_v25 = vor.u32 %v1673_v22, %v1321_v24  ;;  %v244_v10 = vperm.slane %v242_v2, 0  ;;  %v1728_v24 = vld [vmem:[#allocation11 + $0xb4] sm:$0xf0]  ;;  %v1721_v61 = vld [vmem:[#allocation11 + $0x84] sm:$0xf] }
  0x54   :  { %666 = vmatpush.bf16.msrb.mxu2 %v1344_v57 }
  0x55   :  { %691 = vmatpush.bf16.msra.mxu0 %v1356_v32  ;;  %v1734_v32 = vld [vmem:[#allocation11 + $0xe4] sm:$0xf0] }
  0x56   :  { %704 = vmatpush.bf16.msra.mxu1 %v1420_v26  ;;  %679 = vmatpush.bf16.msrb.mxu3 %v1408_v33  ;;  %v1567_v26 = vld [vmem:[#allocation11 + $0xf0] sm:$0xf]  ;;  %v1572_v33 = vor.u32 %v1735_v28, %v1569_v30  ;;  %v1560_v37 = vor.u32 %v1734_v32, %v1559_v31  ;;  %v1714_v30 = vld [vmem:[#allocation11 + $0x44] sm:$0xf0]  ;;  %v1713_v31 = vld [vmem:[#allocation11 + $0x44] sm:$0xf] }
  0x57   :  { %v1568_v29 = vor.u32 %v1736_v27, %v1567_v26  ;;  %v1537_v27 = vld [vmem:[#allocation11 + $0xb8] sm:$0xf0] }
  0x58   :  { %667 = vmatpush.bf16.msrb.mxu2 %v1336_v5  ;;  %v245_v5 = vperm.slane %v242_v2, 1  ;;  %v1708_v2 = vld [vmem:[#allocation11 + $0x14] sm:$0xf0] }
  0x59   :  { %692 = vmatpush.bf16.msra.mxu0 %v1348_v59  ;;  %v1716_v59 = vld [vmem:[#allocation11 + $0x54] sm:$0xf0] }
  0x5a   :  { %705 = vmatpush.bf16.msra.mxu1 %v1412_v34  ;;  %680 = vmatpush.bf16.msrb.mxu3 %v1400_v40  ;;  %v1733_v34 = vld [vmem:[#allocation11 + $0xe4] sm:$0xf]  ;;  %v1505_v40 = vld [vmem:[#allocation11 + $0x78] sm:$0xf0]  ;;  %v1488_v0 = vor.u32 %v1716_v59, %v1487_v58  ;;  %v1511_v59 = vld [vmem:[#allocation11 + $0x80] sm:$0xf] }
  0x5c   :  { %668 = vmatpush.bf16.msrb.mxu2 %v1328_v16 }
  0x5d   :  { %693 = vmatpush.bf16.msra.mxu0 %v1340_v7 }
  0x5e   :  { %706 = vmatpush.bf16.msra.mxu1 %v1404_v42  ;;  %681 = vmatpush.bf16.msrb.mxu3 %v1392_v63  ;;  %v1504_v42 = vor.u32 %v1720_v38, %v1503_v36  ;;  %v1489_v63 = vld [vmem:[#allocation11 + $0x58] sm:$0xf0]  ;;  %v1725_v38 = vld [vmem:[#allocation11 + $0xa4] sm:$0xf] }
  0x60   :  { %669 = vmatpush.bf16.msrb.mxu2 %v1320_v23  ;;  %v1535_v23 = vld [vmem:[#allocation11 + $0xb0] sm:$0xf] }
  0x61   :  { %694 = vmatpush.bf16.msra.mxu0 %v1332_v19  ;;  %v1536_v26 = vor.u32 %v1728_v24, %v1535_v23 }
  0x62   :  { %707 = vmatpush.bf16.msra.mxu1 %v1396_v1  ;;  %682 = vmatpush.bf16.msrb.mxu3 %v1384_v11  ;;  %v1492_v1 = vor.u32 %v1715_v60, %v1489_v63  ;;  %v1722_v60 = vld [vmem:[#allocation11 + $0x84] sm:$0xf0]  ;;  %v1513_v63 = vld [vmem:[#allocation11 + $0x88] sm:$0xf0] }
  0x63   :  { %v1512_v62 = vor.u32 %v1722_v60, %v1511_v59 }
  0x65   :  { %695 = vmatpush.bf16.msra.mxu0 %v1324_v25  ;;  %v1727_v25 = vld [vmem:[#allocation11 + $0xb4] sm:$0xf] }
  0x66   :  { %708 = vmatpush.bf16.msra.mxu1 %v1388_v13  ;;  %v1540_v28 = vor.u32 %v1727_v25, %v1537_v27 }
  0xa5   :  { %v189_v44 = vpop.f32.mrf.mxu0 }
  0xa6   :  { %v190_v45 = vadd.f32 %v189_v44, %v152_v41  ;;  %v202_v46 = vpop.f32.mrf.mxu1  ;;  %v1564_v41 = vor.u32 %v1733_v34, %v1561_v35  ;;  %v1551_v44 = vld [vmem:[#allocation11 + $0xd0] sm:$0xf]  ;;  %v1527_v34 = vld [vmem:[#allocation11 + $0xa0] sm:$0xf]  ;;  %v1726_v35 = vld [vmem:[#allocation11 + $0xa4] sm:$0xf0] }
  0xa7   :  { %v203_v47 = vadd.f32 %v202_v46, %v153_v43  ;;  %v1508_v43 = vor.u32 %v1719_v39, %v1505_v40  ;;  %v1731_v46 = vld [vmem:[#allocation11 + $0xd4] sm:$0xf]  ;;  %v1529_v39 = vld [vmem:[#allocation11 + $0xa8] sm:$0xf0] }
  0xa8   :  { %v206_v48 = vmax.f32 %v190_v45, 0.0  ;;  %v1732_v45 = vld [vmem:[#allocation11 + $0xd4] sm:$0xf0]  ;;  %v1532_v40 = vor.u32 %v1725_v38, %v1529_v39 }
  0xa9   :  { %v207_v49 = vmax.f32 %v203_v47, 0.0  ;;  %v1553_v47 = vld [vmem:[#allocation11 + $0xd8] sm:$0xf0] }
  0xaa   :  { %v208_v50 = vpack.c.bf16 %v206_v48, %v206_v48  ;;  %v1495_v48 = vld [vmem:[#allocation11 + $0x60] sm:$0xf]  ;;  %v1556_v57 = vor.u32 %v1731_v46, %v1553_v47  ;;  %v1519_v47 = vld [vmem:[#allocation11 + $0x90] sm:$0xf]  ;;  %v1748_v39 = vld [vmem:[#allocation13 + $0x58] sm:$0xff] }
  0xab   :  { %v209_v51 = vpack.c.bf16 %v207_v49, %v207_v49  ;;  %v1718_v49 = vld [vmem:[#allocation11 + $0x64] sm:$0xf0] }
  0xac   :  { %416 = vmatmul.bf16.vlgmr.msra.gmra.mxu2 %v208_v50  ;;  %442 = vmatmul.bf16.vlgmr.msrb.gmra.mxu0 %v208_v50  ;;  %v1496_v50 = vor.u32 %v1718_v49, %v1495_v48  ;;  %v1724_v48 = vld [vmem:[#allocation11 + $0x94] sm:$0xf0] }
  0xad   :  { %429 = vmatmul.bf16.vlgmr.msra.gmra.mxu3 %v209_v51  ;;  %455 = vmatmul.bf16.vlgmr.msrb.gmra.mxu1 %v209_v51  ;;  %v191_v52 = vpop.f32.mrf.mxu0  ;;  %v1717_v51 = vld [vmem:[#allocation11 + $0x64] sm:$0xf]  ;;  %v1520_v49 = vor.u32 %v1724_v48, %v1519_v47 }
  0xae   :  { %v204_v53 = vpop.f32.mrf.mxu1  ;;  %929 = vmatpush.bf16.msra.mxu3 %v1568_v29  ;;  %955 = vmatpush.bf16.msrb.mxu1 %v1572_v33  ;;  %v1497_v52 = vld [vmem:[#allocation11 + $0x68] sm:$0xf0]  ;;  %v1479_v29 = vld [vmem:[#allocation11 + $0x40] sm:$0xf] }
  0xaf   :  { %916 = vmatpush.bf16.msra.mxu2 %v1504_v42  ;;  %942 = vmatpush.bf16.msrb.mxu0 %v1508_v43  ;;  %v1552_v53 = vor.u32 %v1732_v45, %v1551_v44  ;;  %v1500_v54 = vor.u32 %v1717_v51, %v1497_v52  ;;  %v1480_v32 = vor.u32 %v1714_v30, %v1479_v29  ;;  %v1481_v33 = vld [vmem:[#allocation11 + $0x48] sm:$0xf0]  ;;  %v1712_v42 = vld [vmem:[#allocation11 + $0x34] sm:$0xf0]  ;;  %v1711_v43 = vld [vmem:[#allocation11 + $0x34] sm:$0xf] }
  0xb0   :  { %v1484_v36 = vor.u32 %v1713_v31, %v1481_v33  ;;  %v1473_v45 = vld [vmem:[#allocation11 + $0x38] sm:$0xf0]  ;;  %v1737_v47 = vld [vmem:[#allocation13] sm:$0xff] }
  0xb1   :  { %v1476_v46 = vor.u32 %v1711_v43, %v1473_v45  ;;  %v1521_v51 = vld [vmem:[#allocation11 + $0x98] sm:$0xf0]  ;;  %v1746_v43 = vld [vmem:[#allocation13 + $0x48] sm:$0xff]  ;;  %v1745_v45 = vld [vmem:[#allocation13 + $0x40] sm:$0xff] }
  0xb2   :  { %930 = vmatpush.bf16.msra.mxu3 %v1560_v37  ;;  %956 = vmatpush.bf16.msrb.mxu1 %v1564_v41  ;;  %v1528_v37 = vor.u32 %v1726_v35, %v1527_v34  ;;  %v1471_v41 = vld [vmem:[#allocation11 + $0x30] sm:$0xf] }
  0xb3   :  { %917 = vmatpush.bf16.msra.mxu2 %v1496_v50  ;;  %943 = vmatpush.bf16.msrb.mxu0 %v1500_v54  ;;  %v1472_v44 = vor.u32 %v1712_v42, %v1471_v41  ;;  %v1723_v50 = vld [vmem:[#allocation11 + $0x94] sm:$0xf]  ;;  %v1710_v54 = vld [vmem:[#allocation11 + $0x24] sm:$0xf0]  ;;  %v1740_v42 = vld [vmem:[#allocation13 + $0x18] sm:$0xff] }
  0xb4   :  { %v1524_v52 = vor.u32 %v1723_v50, %v1521_v51  ;;  %v1747_v41 = vld [vmem:[#allocation13 + $0x50] sm:$0xff] }
  0xb6   :  { %931 = vmatpush.bf16.msra.mxu3 %v1552_v53  ;;  %957 = vmatpush.bf16.msrb.mxu1 %v1556_v57  ;;  %v1463_v53 = vld [vmem:[#allocation11 + $0x20] sm:$0xf]  ;;  %v1465_v57 = vld [vmem:[#allocation11 + $0x28] sm:$0xf0] }
  0xb7   :  { %918 = vmatpush.bf16.msra.mxu2 %v1488_v0  ;;  %944 = vmatpush.bf16.msrb.mxu0 %v1492_v1  ;;  %v1464_v56 = vor.u32 %v1710_v54, %v1463_v53  ;;  %v1468_v58 = vor.u32 %v1709_v55, %v1465_v57  ;;  %v1516_v0 = vor.u32 %v1721_v61, %v1513_v63  ;;  %v1455_v1 = vld [vmem:[#allocation11 + $0x10] sm:$0xf] }
  0xba   :  { %932 = vmatpush.bf16.msra.mxu3 %v1544_v3  ;;  %958 = vmatpush.bf16.msrb.mxu1 %v1548_v4  ;;  %v1456_v3 = vor.u32 %v1708_v2, %v1455_v1  ;;  %v1707_v4 = vld [vmem:[#allocation11 + $0x14] sm:$0xf] }
  0xbb   :  { %919 = vmatpush.bf16.msra.mxu2 %v1480_v32  ;;  %945 = vmatpush.bf16.msrb.mxu0 %v1484_v36 }
  0xbe   :  { %933 = vmatpush.bf16.msra.mxu3 %v1536_v26  ;;  %959 = vmatpush.bf16.msrb.mxu1 %v1540_v28 }
  0xbf   :  { %920 = vmatpush.bf16.msra.mxu2 %v1472_v44  ;;  %946 = vmatpush.bf16.msrb.mxu0 %v1476_v46  ;;  %v1739_v44 = vld [vmem:[#allocation13 + $0x10] sm:$0xff]  ;;  %v1738_v46 = vld [vmem:[#allocation13 + $0x8] sm:$0xff] }
  0xc2   :  { %934 = vmatpush.bf16.msra.mxu3 %v1528_v37  ;;  %960 = vmatpush.bf16.msrb.mxu1 %v1532_v40  ;;  %v1741_v40 = vld [vmem:[#allocation13 + $0x20] sm:$0xff] }
  0xc3   :  { %921 = vmatpush.bf16.msra.mxu2 %v1464_v56  ;;  %947 = vmatpush.bf16.msrb.mxu0 %v1468_v58 }
  0xc6   :  { %935 = vmatpush.bf16.msra.mxu3 %v1520_v49  ;;  %961 = vmatpush.bf16.msrb.mxu1 %v1524_v52  ;;  %v750_v49 = vld [vmem:[%s2102_s8] sm:$0x3] }
  0xc7   :  { %922 = vmatpush.bf16.msra.mxu2 %v1456_v3  ;;  %v753_v50 = vperm.slane %v750_v49, 1  ;;  %v752_v56 = vperm.slane %v750_v49, 0 }
  0xca   :  { %936 = vmatpush.bf16.msra.mxu3 %v1512_v62  ;;  %962 = vmatpush.bf16.msrb.mxu1 %v1516_v0 }
 0x129   :  { %v443_v6 = vpop.f32.mrf.mxu0 }
 0x12a   :  { %v444_v7 = vadd.f32 %v443_v6, %v245_v5  ;;  %v456_v8 = vpop.f32.mrf.mxu1  ;;  %v1457_v5 = vld [vmem:[#allocation11 + $0x18] sm:$0xf0] }
 0x12b   :  { %v1460_v6 = vor.u32 %v1707_v4, %v1457_v5  ;;  %v1765_v4 = vld [vmem:[%s2104_s10] ss:$0 sm:$0xff]  ;;  %s1983_s10 = smov [#allocation14]  }
 0x12c   :  { %v457_v9 = vadd.f32 %v456_v8, %v444_v7  ;;  %v1447_v7 = vld [vmem:[#allocation11] sm:$0xf]  ;;  %v1706_v8 = vld [vmem:[#allocation11 + $0x4] sm:$0xf0]  ;;  %s1156_s14 = sshll.u32 %s1983_s10, 4  ;;  %s1157_s14 = int_to_ptr.vmem [resolvable:$true] %s1156_s14 }
 0x12d   :  { %948 = vmatpush.bf16.msrb.mxu0 %v1460_v6 }
 0x12e   :  { %v461_v11 = vmax.f32 %v457_v9, 0.0  ;;  %v1705_v9 = vld [vmem:[#allocation11 + $0x4] sm:$0xf] }
 0x12f   :  { %v417_v12 = vpop.f32.mrf.mxu2 }
 0x130   :  { %v463_v13 = vpack.c.bf16 %v461_v11, %v461_v11  ;;  %v418_v14 = vadd.f32 %v417_v12, %v244_v10  ;;  %v430_v15 = vpop.f32.mrf.mxu3  ;;  %v1448_v10 = vor.u32 %v1706_v8, %v1447_v7  ;;  %v1449_v11 = vld [vmem:[#allocation11 + $0x8] sm:$0xf0] }
 0x131   :  { %v445_v16 = vpop.f32.mrf.mxu0  ;;  %v1452_v12 = vor.u32 %v1705_v9, %v1449_v11 }
 0x132   :  { %v431_v17 = vadd.f32 %v430_v15, %v418_v14  ;;  %v458_v18 = vpop.f32.mrf.mxu1  ;;  %683 = vmatmul.bf16.vlgmr.msrb.gmra.mxu3 %v463_v13  ;;  %709 = vmatmul.bf16.vlgmr.msra.gmra.mxu1 %v463_v13  ;;  %v1752_v13 = vld [vmem:[#allocation13 + $0x78] sm:$0xff]  ;;  %v1751_v15 = vld [vmem:[#allocation13 + $0x70] sm:$0xff] }
 0x133   :  { %923 = vmatpush.bf16.msra.mxu2 %v1448_v10  ;;  %949 = vmatpush.bf16.msrb.mxu0 %v1452_v12  ;;  %v1744_v14 = vld [vmem:[#allocation13 + $0x38] sm:$0xff]  ;;  %v1743_v16 = vld [vmem:[#allocation13 + $0x30] sm:$0xff]  ;;  %v1742_v18 = vld [vmem:[#allocation13 + $0x28] sm:$0xff] }
 0x134   :  { %v460_v19 = vmax.f32 %v431_v17, 0.0  ;;  %1117 = vmatpush.bf16.msrb.mxu3 %v1752_v13  ;;  %v1750_v17 = vld [vmem:[#allocation13 + $0x68] sm:$0xff] }
 0x136   :  { %v462_v20 = vpack.c.bf16 %v460_v19, %v460_v19  ;;  %v1749_v19 = vld [vmem:[#allocation13 + $0x60] sm:$0xff] }
 0x137   :  { %v419_v21 = vpop.f32.mrf.mxu2 }
 0x138   :  { %v432_v22 = vpop.f32.mrf.mxu3  ;;  %670 = vmatmul.bf16.vlgmr.msrb.gmra.mxu2 %v462_v20  ;;  %696 = vmatmul.bf16.vlgmr.msra.gmra.mxu0 %v462_v20  ;;  %v496_v21 = vld [vmem:[%s2100_s6] sm:$0x3] }
 0x139   :  { %1104 = vmatpush.bf16.msrb.mxu2 %v1744_v14  ;;  %1118 = vmatpush.bf16.msrb.mxu3 %v1751_v15  ;;  %v499_v22 = vperm.slane %v496_v21, 1  ;;  %v498_v28 = vperm.slane %v496_v21, 0 }
 0x13d   :  { %1105 = vmatpush.bf16.msrb.mxu2 %v1743_v16  ;;  %1119 = vmatpush.bf16.msrb.mxu3 %v1750_v17  ;;  %v1146_v17 = vlaneseq }
 0x141   :  { %1106 = vmatpush.bf16.msrb.mxu2 %v1742_v18  ;;  %1120 = vmatpush.bf16.msrb.mxu3 %v1749_v19 }
 0x145   :  { %1121 = vmatpush.bf16.msrb.mxu3 %v1748_v39  ;;  %1107 = vmatpush.bf16.msrb.mxu2 %v1741_v40 }
 0x149   :  { %1122 = vmatpush.bf16.msrb.mxu3 %v1747_v41  ;;  %1108 = vmatpush.bf16.msrb.mxu2 %v1740_v42 }
 0x14d   :  { %1123 = vmatpush.bf16.msrb.mxu3 %v1746_v43  ;;  %1109 = vmatpush.bf16.msrb.mxu2 %v1739_v44 }
 0x151   :  { %1124 = vmatpush.bf16.msrb.mxu3 %v1745_v45  ;;  %1110 = vmatpush.bf16.msrb.mxu2 %v1738_v46 }
 0x155   :  { %1111 = vmatpush.bf16.msrb.mxu2 %v1737_v47 }
 0x1af   :  { %v710_v20 = vpop.f32.mrf.mxu1 }
 0x1b5   :  { %v684_v23 = vpop.f32.mrf.mxu3  ;;  %v697_v24 = vpop.f32.mrf.mxu0 }
 0x1b6   :  { %v698_v25 = vadd.f32 %v697_v24, %v499_v22  ;;  %v1147_v22 = vand.u32 127, %v1146_v17 }
 0x1b7   :  { %v712_v26 = vpop.f32.mrf.mxu1 }
 0x1b8   :  { %v711_v27 = vadd.f32 %v710_v20, %v698_v25  ;;  %vm1148_vm2 = vcmp.lt.s32.totalorder %v1147_v22, 8 }
 0x1ba   :  { %v715_v29 = vmax.f32 %v711_v27, 0.0 }
 0x1bb   :  { %v671_v30 = vpop.f32.mrf.mxu2 }
 0x1bc   :  { %v717_v31 = vpack.c.bf16 %v715_v29, %v715_v29  ;;  %v672_v32 = vadd.f32 %v671_v30, %v498_v28 }
 0x1bd   :  { %v686_v33 = vpop.f32.mrf.mxu3  ;;  %v699_v34 = vpop.f32.mrf.mxu0 }
 0x1be   :  { %v685_v35 = vadd.f32 %v684_v23, %v672_v32  ;;  %937 = vmatmul.bf16.vlgmr.msra.gmra.mxu3 %v717_v31  ;;  %963 = vmatmul.bf16.vlgmr.msrb.gmra.mxu1 %v717_v31 }
 0x1c0   :  { %v714_v36 = vmax.f32 %v685_v35, 0.0 }
 0x1c2   :  { %v716_v37 = vpack.c.bf16 %v714_v36, %v714_v36 }
 0x1c3   :  { %v673_v38 = vpop.f32.mrf.mxu2 }
 0x1c4   :  { %924 = vmatmul.bf16.vlgmr.msra.gmra.mxu2 %v716_v37  ;;  %950 = vmatmul.bf16.vlgmr.msrb.gmra.mxu0 %v716_v37 }
 0x23b   :  { %v964_v48 = vpop.f32.mrf.mxu1 }
 0x241   :  { %v938_v51 = vpop.f32.mrf.mxu3  ;;  %v951_v52 = vpop.f32.mrf.mxu0 }
 0x242   :  { %v952_v53 = vadd.f32 %v951_v52, %v753_v50 }
 0x243   :  { %v966_v54 = vpop.f32.mrf.mxu1 }
 0x244   :  { %v965_v55 = vadd.f32 %v964_v48, %v952_v53 }
 0x246   :  { %v969_v57 = vmax.f32 %v965_v55, 0.0 }
 0x247   :  { %v925_v58 = vpop.f32.mrf.mxu2 }
 0x248   :  { %v971_v59 = vpack.c.bf16 %v969_v57, %v969_v57  ;;  %v926_v60 = vadd.f32 %v925_v58, %v752_v56 }
 0x249   :  { %v940_v61 = vpop.f32.mrf.mxu3  ;;  %v953_v62 = vpop.f32.mrf.mxu0 }
 0x24a   :  { %v939_v63 = vadd.f32 %v938_v51, %v926_v60  ;;  %1125 = vmatmul.bf16.vlgmr.msrb.gmra.mxu3 %v971_v59 }
 0x24c   :  { %v968_v0 = vmax.f32 %v939_v63, 0.0 }
 0x24e   :  { %v970_v1 = vpack.c.bf16 %v968_v0, %v968_v0 }
 0x24f   :  { %v927_v2 = vpop.f32.mrf.mxu2 }
 0x250   :  { %1112 = vmatmul.bf16.vlgmr.msrb.gmra.mxu2 %v970_v1 }
 0x2cd   :  { %v1126_v3 = vpop.f32.mrf.mxu3 }
 0x2d3   :  { %v1113_v5 = vpop.f32.mrf.mxu2 }
 0x2d4   :  { %v1114_v6 = vadd.f32 %v1765_v4, %v1113_v5 }
 0x2d5   :  { %v1128_v7 = vpop.f32.mrf.mxu3 }
 0x2d6   :  { %v1127_v8 = vadd.f32 %v1126_v3, %v1114_v6 }
 0x2d8   :  { %v1131_v9 = vand.u32 2147483647, %v1127_v8  ;;  %v1130_v23 = vmax.f32 %v1127_v8, 0.0 }
 0x2da   :  { %v1132_v10 = vsub.f32 0.0, %v1131_v9 }
 0x2db   :  { %v1115_v11 = vpop.f32.mrf.mxu2 }
 0x2dc   :  { %v1133_v12 = vmul.f32 1.442695, %v1132_v10 }
 0x2de   :  { %1766 = vpow2.f32 %v1133_v12 }
 0x2e4   :  { %v1767_v13 = vpop.eup %1766 }
 0x2e5   :  { %v1135_v14 = vadd.f32 1.0, %v1767_v13  ;;  %v1138_v15 = vmul.f32 -0.5, %v1767_v13  ;;  %v1141_v18 = vand.u32 2147483647, %v1767_v13 }
 0x2e7   :  { %1768 = vlog2.f32 %v1135_v14  ;;  %v1139_v16 = vadd.f32 1.0, %v1138_v15  ;;  %vm1142_vm1 = vcmp.lt.f32.partialorder %v1141_v18, 0.0004427343 }
 0x2e9   :  { %v1140_v21 = vmul.f32 %v1767_v13, %v1139_v16 }
 0x2ed   :  { %v1769_v19 = vpop.eup %1768 }
 0x2ee   :  { %v1137_v20 = vmul.f32 0.6931472, %v1769_v19 }
 0x2f0   :  { %v1143_v24 = vsel %vm1142_vm1, %v1140_v21, %v1137_v20 }
 0x2f1   :  { %v1144_v25 = vadd.f32 %v1143_v24, %v1130_v23 }
 0x2f3   :  { %v1145_v26 = vadd.f32 1e-07, %v1144_v25 }
 0x2f5   :  { %v1149_v27 = vsel %vm1148_vm2, %v1127_v8, %v1145_v26 }
 0x2f6   :  { %1150 = vst [vmem:[#allocation14] sm:$0xff] %v1149_v27 }
 0x2f7   :  { %1161 = dma.vmem_to_hbm [thread:$0]  %s1157_s14, 128, %s1159_s7, [#allocation4]  }
 0x2f8   :  { %1970 = dma.done.wait [#allocation4], 128  }
 0x2f9   :  { %1971 = vsyncadd [#allocation4], 4294967168 }
 0x2fa   :  { %1166 = vsyncpa [#allocation3], 1 }
 0x2fb   :  { %1167 = vsyncpa [#allocation6], 1 }
 0x2fc   :  { %1168 = vsyncpa [#allocation9], 1 }
 0x2fd   :  { %1169 = vsyncpa [#allocation12], 1 }
 0x2fe   :  { %1170 = vsyncpa [#allocation4], 1 }

</bundles_post_ra>
